<compile_context>
chip_gen: v7x
topology: tpu7x:2x2x1
jax: 0.10.0
libtpu: 0.0.40
codegen_flags: <defaults>
</compile_context>

<pallas_src>
import functools

import jax
import jax.numpy as jnp
from jax import lax
from jax.experimental import pallas as pl
from jax.experimental.pallas import tpu as pltpu


def _fused_conv3d_innorm_lrelu_kernel(
    xp_ref,    # (1, Cin, Lp)    padded input, padded-flat spatial on the lane axis
    w_ref,     # (27, Cout, Cin) one (Cout, Cin) tap matrix per (kd, kh, kw) offset
    b_ref,     # (Cout, 1)       conv bias
    g_ref,     # (Cout, 1)       InstanceNorm gamma
    be_ref,    # (Cout, 1)       InstanceNorm beta
    m_ref,     # (1, Q)          1.0 at valid output positions, 0.0 at pad-garbage cols
    o_ref,     # (1, Cout, Q)    output, padded-flat layout (lane-dense)
    *, Q, Hp2, Wp2, inv_count,
):
    # ---- conv3x3x3 as 27 accumulated (Cout, Cin) x (Cin, Q) matmuls ----
    acc = None
    k = 0
    for kd in range(3):
        for kh in range(3):
            for kw in range(3):
                off = kd * Hp2 * Wp2 + kh * Wp2 + kw          # static flat offset of this tap
                rhs = xp_ref[0, :, pl.ds(off, Q)]              # (Cin, Q), contiguous lane slice
                contrib = jnp.dot(w_ref[k], rhs,
                                  preferred_element_type=jnp.float32)
                acc = contrib if acc is None else acc + contrib
                k += 1
    acc = acc + b_ref[...]                                     # conv bias (Cout, 1) broadcast

    # ---- fused InstanceNorm (biased var, eps=1e-5) + LeakyReLU(0.01) ----
    m = m_ref[...]                                             # (1, Q) validity mask
    accm = acc * m                                             # zero out pad-garbage columns
    s1 = jnp.sum(accm, axis=1, keepdims=True)                  # (Cout, 1)
    s2 = jnp.sum(accm * accm, axis=1, keepdims=True)           # single sweep: E[x^2] - mean^2
    mean = s1 * inv_count
    var = s2 * inv_count - mean * mean
    inv = lax.rsqrt(var + jnp.float32(1e-5))
    z = (acc - mean) * inv * g_ref[...] + be_ref[...]
    o_ref[0] = jnp.where(z >= 0, z, jnp.float32(0.01) * z)     # garbage cols are discarded later


@jax.jit
def conv3d_forward(x, w, b, gamma, beta):
    """Conv3d(k=3, p=1, s=1, bias) -> InstanceNorm3d(affine, eps=1e-5) -> LeakyReLU(0.01).

    x: (N, Cin, D, H, W); w: (Cout, Cin, 3, 3, 3); b/gamma/beta: (Cout,).
    Returns (N, Cout, D, H, W) float32 (matches Conv3D.forward defaults)."""
    N, Cin, D, H, W = x.shape
    Cout = w.shape[0]
    assert w.shape == (Cout, Cin, 3, 3, 3), "this kernel specializes kernel_size=3, padding=1, stride=1"

    Hp2, Wp2 = H + 2, W + 2
    Q = D * Hp2 * Wp2                   # per-sample padded-flat output extent (lane axis)
    Lp = (D + 3) * Hp2 * Wp2            # extra trailing D-plane keeps every tap slice in bounds

    xf = x.astype(jnp.float32)
    # pad D by (1, 2) (trailing zero plane for the tap-slice bound), H/W by (1, 1)
    xp = jnp.pad(xf, ((0, 0), (0, 0), (1, 2), (1, 1), (1, 1)))
    xp_flat = xp.reshape(N, Cin, Lp)

    # weights -> (kd, kh, kw, Cout, Cin) -> (27, Cout, Cin); per-channel params as (Cout, 1)
    w_taps = jnp.transpose(w.astype(jnp.float32), (2, 3, 4, 0, 1)).reshape(27, Cout, Cin)
    b2 = b.astype(jnp.float32).reshape(Cout, 1)
    g2 = gamma.astype(jnp.float32).reshape(Cout, 1)
    be2 = beta.astype(jnp.float32).reshape(Cout, 1)

    # validity mask over padded-flat coords (d, h, w): valid iff h < H and w < W
    valid_hw = (jnp.arange(Hp2)[:, None] < H) & (jnp.arange(Wp2)[None, :] < W)
    mask = jnp.broadcast_to(valid_hw[None], (D, Hp2, Wp2)).reshape(1, Q).astype(jnp.float32)

    kernel = functools.partial(
        _fused_conv3d_innorm_lrelu_kernel,
        Q=Q, Hp2=Hp2, Wp2=Wp2, inv_count=1.0 / float(D * H * W))

    block_bytes = 4 * (Cin * Lp + 27 * Cout * Cin + 3 * Cout + Q + Cout * Q)
    vmem_limit = int(min(64 * 2**20, max(16 * 2**20, 6 * block_bytes)))
    cost = pl.CostEstimate(
        flops=int(2 * N * 27 * Cout * Cin * Q + 10 * N * Cout * Q),
        transcendentals=int(N * Cout),
        bytes_accessed=int(4 * (N * Cin * Lp + N * Cout * Q + 27 * Cout * Cin + 3 * Cout + Q)),
    )

    out_z = pl.pallas_call(
        kernel,
        out_shape=jax.ShapeDtypeStruct((N, Cout, Q), jnp.float32),
        grid_spec=pltpu.PrefetchScalarGridSpec(
            num_scalar_prefetch=0,
            grid=(N,),
            in_specs=[
                pl.BlockSpec((1, Cin, Lp), lambda n: (n, 0, 0)),
                pl.BlockSpec((27, Cout, Cin), lambda n: (0, 0, 0)),
                pl.BlockSpec((Cout, 1), lambda n: (0, 0)),
                pl.BlockSpec((Cout, 1), lambda n: (0, 0)),
                pl.BlockSpec((Cout, 1), lambda n: (0, 0)),
                pl.BlockSpec((1, Q), lambda n: (0, 0)),
            ],
            out_specs=pl.BlockSpec((1, Cout, Q), lambda n: (n, 0, 0)),
        ),
        compiler_params=pltpu.CompilerParams(
            dimension_semantics=("parallel",),
            vmem_limit_bytes=vmem_limit,
        ),
        cost_estimate=cost,
    )(xp_flat, w_taps, b2, g2, be2, mask)

    # strip the H/W pad-garbage columns (norm is permutation-invariant, already applied in-kernel)
    out = out_z.reshape(N, Cout, D, Hp2, Wp2)[:, :, :, :H, :W]
    return out


def _reference_forward(x, w, b, gamma, beta):
    # Pure-JAX reference with identical semantics (Conv3d k=3/p=1/s=1 + bias,
    # InstanceNorm3d biased var eps=1e-5 affine, LeakyReLU slope 0.01).
    y = lax.conv_general_dilated(
        x, w, window_strides=(1, 1, 1), padding=((1, 1), (1, 1), (1, 1)),
        dimension_numbers=("NCDHW", "OIDHW", "NCDHW"),
        precision=lax.Precision.HIGHEST)
    y = y + b.reshape(1, -1, 1, 1, 1)
    mean = jnp.mean(y, axis=(2, 3, 4), keepdims=True)
    var = jnp.mean(jnp.square(y - mean), axis=(2, 3, 4), keepdims=True)
    z = (y - mean) * lax.rsqrt(var + 1e-5)
    z = z * gamma.reshape(1, -1, 1, 1, 1) + beta.reshape(1, -1, 1, 1, 1)
    return jnp.where(z >= 0, z, 0.01 * z)


if __name__ == "__main__":
    key = jax.random.PRNGKey(0)
    kx, kw, kb, kg, kbe = jax.random.split(key, 5)

    N, Cin, Cout, D, H, W = 2, 4, 8, 8, 8, 8
    x = jax.random.normal(kx, (N, Cin, D, H, W), dtype=jnp.float32)
    w = 0.1 * jax.random.normal(kw, (Cout, Cin, 3, 3, 3), dtype=jnp.float32)
    b = 0.1 * jax.random.normal(kb, (Cout,), dtype=jnp.float32)
    gamma = 1.0 + 0.1 * jax.random.normal(kg, (Cout,), dtype=jnp.float32)
    beta = 0.1 * jax.random.normal(kbe, (Cout,), dtype=jnp.float32)

    out = conv3d_forward(x, w, b, gamma, beta)
    out = jax.block_until_ready(out)

    ref = _reference_forward(x, w, b, gamma, beta)
    assert out.shape == (N, Cout, D, H, W)
    max_err = float(jnp.max(jnp.abs(out - ref)))
    assert jnp.allclose(out, ref, atol=1e-3, rtol=1e-3), f"max abs err = {max_err}"

    print("KERNEL_OK")
</pallas_src>

<mosaic_0001>
module attributes {stable_mosaic.version = 11 : i64} {
  func.func @_fused_conv3d_innorm_lrelu_kernel(%arg0: i32, %arg1: memref<1x4x1100xf32, #tpu.memory_space<vmem>>, %arg2: memref<27x8x4xf32, #tpu.memory_space<vmem>>, %arg3: memref<8x1xf32, #tpu.memory_space<vmem>>, %arg4: memref<8x1xf32, #tpu.memory_space<vmem>>, %arg5: memref<8x1xf32, #tpu.memory_space<vmem>>, %arg6: memref<1x800xf32, #tpu.memory_space<vmem>>, %arg7: memref<1x8x800xf32, #tpu.memory_space<vmem>>) attributes {dimension_semantics = [#tpu.dimension_semantics<parallel>], iteration_bounds = array<i64: 2>, scalar_prefetch = 0 : i64, scratch_operands = 0 : i64, tpu.core_type = #tpu.core_type<tc>, window_params = [{transform_indices = @transform_0, window_bounds = array<i64: 1, 4, 1100>}, {pipeline_mode = #tpu.pipeline_mode<synchronous>, transform_indices = @transform_1, window_bounds = array<i64: 27, 8, 4>}, {pipeline_mode = #tpu.pipeline_mode<synchronous>, transform_indices = @transform_2, window_bounds = array<i64: 8, 1>}, {pipeline_mode = #tpu.pipeline_mode<synchronous>, transform_indices = @transform_3, window_bounds = array<i64: 8, 1>}, {pipeline_mode = #tpu.pipeline_mode<synchronous>, transform_indices = @transform_4, window_bounds = array<i64: 8, 1>}, {pipeline_mode = #tpu.pipeline_mode<synchronous>, transform_indices = @transform_5, window_bounds = array<i64: 1, 800>}, {transform_indices = @transform_6, window_bounds = array<i64: 1, 8, 800>}]} {
    %c0 = arith.constant 0 : index
    %c0_0 = arith.constant 0 : index
    %c0_1 = arith.constant 0 : index
    %0 = vector.load %arg1[%c0, %c0_0, %c0_1] : memref<1x4x1100xf32, #tpu.memory_space<vmem>>, vector<1x4x800xf32>
    %1 = vector.shape_cast %0 : vector<1x4x800xf32> to vector<4x800xf32>
    %c0_2 = arith.constant 0 : index
    %c0_3 = arith.constant 0 : index
    %c0_4 = arith.constant 0 : index
    %2 = vector.load %arg2[%c0_2, %c0_3, %c0_4] : memref<27x8x4xf32, #tpu.memory_space<vmem>>, vector<1x8x4xf32>
    %3 = vector.shape_cast %2 : vector<1x8x4xf32> to vector<8x4xf32>
    %cst = arith.constant dense<0.000000e+00> : vector<8x800xf32>
    %4 = tpu.matmul %3, %1, %cst {dimension_numbers = #tpu.dot_dimension_numbers<[1], [0], [0], [1], [0, 0, 1, 1], [], []>} : vector<8x4xf32>, vector<4x800xf32>, vector<8x800xf32> -> vector<8x800xf32>
    %c0_5 = arith.constant 0 : index
    %c0_6 = arith.constant 0 : index
    %c1 = arith.constant 1 : index
    %5 = vector.load %arg1[%c0_5, %c0_6, %c1] : memref<1x4x1100xf32, #tpu.memory_space<vmem>>, vector<1x4x800xf32>
    %6 = vector.shape_cast %5 : vector<1x4x800xf32> to vector<4x800xf32>
    %c1_7 = arith.constant 1 : index
    %c0_8 = arith.constant 0 : index
    %c0_9 = arith.constant 0 : index
    %7 = vector.load %arg2[%c1_7, %c0_8, %c0_9] : memref<27x8x4xf32, #tpu.memory_space<vmem>>, vector<1x8x4xf32>
    %8 = vector.shape_cast %7 : vector<1x8x4xf32> to vector<8x4xf32>
    %cst_10 = arith.constant dense<0.000000e+00> : vector<8x800xf32>
    %9 = tpu.matmul %8, %6, %cst_10 {dimension_numbers = #tpu.dot_dimension_numbers<[1], [0], [0], [1], [0, 0, 1, 1], [], []>} : vector<8x4xf32>, vector<4x800xf32>, vector<8x800xf32> -> vector<8x800xf32>
    %10 = arith.addf %4, %9 : vector<8x800xf32>
    %c0_11 = arith.constant 0 : index
    %c0_12 = arith.constant 0 : index
    %c2 = arith.constant 2 : index
    %11 = vector.load %arg1[%c0_11, %c0_12, %c2] : memref<1x4x1100xf32, #tpu.memory_space<vmem>>, vector<1x4x800xf32>
    %12 = vector.shape_cast %11 : vector<1x4x800xf32> to vector<4x800xf32>
    %c2_13 = arith.constant 2 : index
    %c0_14 = arith.constant 0 : index
    %c0_15 = arith.constant 0 : index
    %13 = vector.load %arg2[%c2_13, %c0_14, %c0_15] : memref<27x8x4xf32, #tpu.memory_space<vmem>>, vector<1x8x4xf32>
    %14 = vector.shape_cast %13 : vector<1x8x4xf32> to vector<8x4xf32>
    %cst_16 = arith.constant dense<0.000000e+00> : vector<8x800xf32>
    %15 = tpu.matmul %14, %12, %cst_16 {dimension_numbers = #tpu.dot_dimension_numbers<[1], [0], [0], [1], [0, 0, 1, 1], [], []>} : vector<8x4xf32>, vector<4x800xf32>, vector<8x800xf32> -> vector<8x800xf32>
    %16 = arith.addf %10, %15 : vector<8x800xf32>
    %c0_17 = arith.constant 0 : index
    %c0_18 = arith.constant 0 : index
    %c10 = arith.constant 10 : index
    %17 = vector.load %arg1[%c0_17, %c0_18, %c10] : memref<1x4x1100xf32, #tpu.memory_space<vmem>>, vector<1x4x800xf32>
    %18 = vector.shape_cast %17 : vector<1x4x800xf32> to vector<4x800xf32>
    %c3 = arith.constant 3 : index
    %c0_19 = arith.constant 0 : index
    %c0_20 = arith.constant 0 : index
    %19 = vector.load %arg2[%c3, %c0_19, %c0_20] : memref<27x8x4xf32, #tpu.memory_space<vmem>>, vector<1x8x4xf32>
    %20 = vector.shape_cast %19 : vector<1x8x4xf32> to vector<8x4xf32>
    %cst_21 = arith.constant dense<0.000000e+00> : vector<8x800xf32>
    %21 = tpu.matmul %20, %18, %cst_21 {dimension_numbers = #tpu.dot_dimension_numbers<[1], [0], [0], [1], [0, 0, 1, 1], [], []>} : vector<8x4xf32>, vector<4x800xf32>, vector<8x800xf32> -> vector<8x800xf32>
    %22 = arith.addf %16, %21 : vector<8x800xf32>
    %c0_22 = arith.constant 0 : index
    %c0_23 = arith.constant 0 : index
    %c11 = arith.constant 11 : index
    %23 = vector.load %arg1[%c0_22, %c0_23, %c11] : memref<1x4x1100xf32, #tpu.memory_space<vmem>>, vector<1x4x800xf32>
    %24 = vector.shape_cast %23 : vector<1x4x800xf32> to vector<4x800xf32>
    %c4 = arith.constant 4 : index
    %c0_24 = arith.constant 0 : index
    %c0_25 = arith.constant 0 : index
    %25 = vector.load %arg2[%c4, %c0_24, %c0_25] : memref<27x8x4xf32, #tpu.memory_space<vmem>>, vector<1x8x4xf32>
    %26 = vector.shape_cast %25 : vector<1x8x4xf32> to vector<8x4xf32>
    %cst_26 = arith.constant dense<0.000000e+00> : vector<8x800xf32>
    %27 = tpu.matmul %26, %24, %cst_26 {dimension_numbers = #tpu.dot_dimension_numbers<[1], [0], [0], [1], [0, 0, 1, 1], [], []>} : vector<8x4xf32>, vector<4x800xf32>, vector<8x800xf32> -> vector<8x800xf32>
    %28 = arith.addf %22, %27 : vector<8x800xf32>
    %c0_27 = arith.constant 0 : index
    %c0_28 = arith.constant 0 : index
    %c12 = arith.constant 12 : index
    %29 = vector.load %arg1[%c0_27, %c0_28, %c12] : memref<1x4x1100xf32, #tpu.memory_space<vmem>>, vector<1x4x800xf32>
    %30 = vector.shape_cast %29 : vector<1x4x800xf32> to vector<4x800xf32>
    %c5 = arith.constant 5 : index
    %c0_29 = arith.constant 0 : index
    %c0_30 = arith.constant 0 : index
    %31 = vector.load %arg2[%c5, %c0_29, %c0_30] : memref<27x8x4xf32, #tpu.memory_space<vmem>>, vector<1x8x4xf32>
    %32 = vector.shape_cast %31 : vector<1x8x4xf32> to vector<8x4xf32>
    %cst_31 = arith.constant dense<0.000000e+00> : vector<8x800xf32>
    %33 = tpu.matmul %32, %30, %cst_31 {dimension_numbers = #tpu.dot_dimension_numbers<[1], [0], [0], [1], [0, 0, 1, 1], [], []>} : vector<8x4xf32>, vector<4x800xf32>, vector<8x800xf32> -> vector<8x800xf32>
    %34 = arith.addf %28, %33 : vector<8x800xf32>
    %c0_32 = arith.constant 0 : index
    %c0_33 = arith.constant 0 : index
    %c20 = arith.constant 20 : index
    %35 = vector.load %arg1[%c0_32, %c0_33, %c20] : memref<1x4x1100xf32, #tpu.memory_space<vmem>>, vector<1x4x800xf32>
    %36 = vector.shape_cast %35 : vector<1x4x800xf32> to vector<4x800xf32>
    %c6 = arith.constant 6 : index
    %c0_34 = arith.constant 0 : index
    %c0_35 = arith.constant 0 : index
    %37 = vector.load %arg2[%c6, %c0_34, %c0_35] : memref<27x8x4xf32, #tpu.memory_space<vmem>>, vector<1x8x4xf32>
    %38 = vector.shape_cast %37 : vector<1x8x4xf32> to vector<8x4xf32>
    %cst_36 = arith.constant dense<0.000000e+00> : vector<8x800xf32>
    %39 = tpu.matmul %38, %36, %cst_36 {dimension_numbers = #tpu.dot_dimension_numbers<[1], [0], [0], [1], [0, 0, 1, 1], [], []>} : vector<8x4xf32>, vector<4x800xf32>, vector<8x800xf32> -> vector<8x800xf32>
    %40 = arith.addf %34, %39 : vector<8x800xf32>
    %c0_37 = arith.constant 0 : index
    %c0_38 = arith.constant 0 : index
    %c21 = arith.constant 21 : index
    %41 = vector.load %arg1[%c0_37, %c0_38, %c21] : memref<1x4x1100xf32, #tpu.memory_space<vmem>>, vector<1x4x800xf32>
    %42 = vector.shape_cast %41 : vector<1x4x800xf32> to vector<4x800xf32>
    %c7 = arith.constant 7 : index
    %c0_39 = arith.constant 0 : index
    %c0_40 = arith.constant 0 : index
    %43 = vector.load %arg2[%c7, %c0_39, %c0_40] : memref<27x8x4xf32, #tpu.memory_space<vmem>>, vector<1x8x4xf32>
    %44 = vector.shape_cast %43 : vector<1x8x4xf32> to vector<8x4xf32>
    %cst_41 = arith.constant dense<0.000000e+00> : vector<8x800xf32>
    %45 = tpu.matmul %44, %42, %cst_41 {dimension_numbers = #tpu.dot_dimension_numbers<[1], [0], [0], [1], [0, 0, 1, 1], [], []>} : vector<8x4xf32>, vector<4x800xf32>, vector<8x800xf32> -> vector<8x800xf32>
    %46 = arith.addf %40, %45 : vector<8x800xf32>
    %c0_42 = arith.constant 0 : index
    %c0_43 = arith.constant 0 : index
    %c22 = arith.constant 22 : index
    %47 = vector.load %arg1[%c0_42, %c0_43, %c22] : memref<1x4x1100xf32, #tpu.memory_space<vmem>>, vector<1x4x800xf32>
    %48 = vector.shape_cast %47 : vector<1x4x800xf32> to vector<4x800xf32>
    %c8 = arith.constant 8 : index
    %c0_44 = arith.constant 0 : index
    %c0_45 = arith.constant 0 : index
    %49 = vector.load %arg2[%c8, %c0_44, %c0_45] : memref<27x8x4xf32, #tpu.memory_space<vmem>>, vector<1x8x4xf32>
    %50 = vector.shape_cast %49 : vector<1x8x4xf32> to vector<8x4xf32>
    %cst_46 = arith.constant dense<0.000000e+00> : vector<8x800xf32>
    %51 = tpu.matmul %50, %48, %cst_46 {dimension_numbers = #tpu.dot_dimension_numbers<[1], [0], [0], [1], [0, 0, 1, 1], [], []>} : vector<8x4xf32>, vector<4x800xf32>, vector<8x800xf32> -> vector<8x800xf32>
    %52 = arith.addf %46, %51 : vector<8x800xf32>
    %c0_47 = arith.constant 0 : index
    %c0_48 = arith.constant 0 : index
    %c100 = arith.constant 100 : index
    %53 = vector.load %arg1[%c0_47, %c0_48, %c100] : memref<1x4x1100xf32, #tpu.memory_space<vmem>>, vector<1x4x800xf32>
    %54 = vector.shape_cast %53 : vector<1x4x800xf32> to vector<4x800xf32>
    %c9 = arith.constant 9 : index
    %c0_49 = arith.constant 0 : index
    %c0_50 = arith.constant 0 : index
    %55 = vector.load %arg2[%c9, %c0_49, %c0_50] : memref<27x8x4xf32, #tpu.memory_space<vmem>>, vector<1x8x4xf32>
    %56 = vector.shape_cast %55 : vector<1x8x4xf32> to vector<8x4xf32>
    %cst_51 = arith.constant dense<0.000000e+00> : vector<8x800xf32>
    %57 = tpu.matmul %56, %54, %cst_51 {dimension_numbers = #tpu.dot_dimension_numbers<[1], [0], [0], [1], [0, 0, 1, 1], [], []>} : vector<8x4xf32>, vector<4x800xf32>, vector<8x800xf32> -> vector<8x800xf32>
    %58 = arith.addf %52, %57 : vector<8x800xf32>
    %c0_52 = arith.constant 0 : index
    %c0_53 = arith.constant 0 : index
    %c101 = arith.constant 101 : index
    %59 = vector.load %arg1[%c0_52, %c0_53, %c101] : memref<1x4x1100xf32, #tpu.memory_space<vmem>>, vector<1x4x800xf32>
    %60 = vector.shape_cast %59 : vector<1x4x800xf32> to vector<4x800xf32>
    %c10_54 = arith.constant 10 : index
    %c0_55 = arith.constant 0 : index
    %c0_56 = arith.constant 0 : index
    %61 = vector.load %arg2[%c10_54, %c0_55, %c0_56] : memref<27x8x4xf32, #tpu.memory_space<vmem>>, vector<1x8x4xf32>
    %62 = vector.shape_cast %61 : vector<1x8x4xf32> to vector<8x4xf32>
    %cst_57 = arith.constant dense<0.000000e+00> : vector<8x800xf32>
    %63 = tpu.matmul %62, %60, %cst_57 {dimension_numbers = #tpu.dot_dimension_numbers<[1], [0], [0], [1], [0, 0, 1, 1], [], []>} : vector<8x4xf32>, vector<4x800xf32>, vector<8x800xf32> -> vector<8x800xf32>
    %64 = arith.addf %58, %63 : vector<8x800xf32>
    %c0_58 = arith.constant 0 : index
    %c0_59 = arith.constant 0 : index
    %c102 = arith.constant 102 : index
    %65 = vector.load %arg1[%c0_58, %c0_59, %c102] : memref<1x4x1100xf32, #tpu.memory_space<vmem>>, vector<1x4x800xf32>
    %66 = vector.shape_cast %65 : vector<1x4x800xf32> to vector<4x800xf32>
    %c11_60 = arith.constant 11 : index
    %c0_61 = arith.constant 0 : index
    %c0_62 = arith.constant 0 : index
    %67 = vector.load %arg2[%c11_60, %c0_61, %c0_62] : memref<27x8x4xf32, #tpu.memory_space<vmem>>, vector<1x8x4xf32>
    %68 = vector.shape_cast %67 : vector<1x8x4xf32> to vector<8x4xf32>
    %cst_63 = arith.constant dense<0.000000e+00> : vector<8x800xf32>
    %69 = tpu.matmul %68, %66, %cst_63 {dimension_numbers = #tpu.dot_dimension_numbers<[1], [0], [0], [1], [0, 0, 1, 1], [], []>} : vector<8x4xf32>, vector<4x800xf32>, vector<8x800xf32> -> vector<8x800xf32>
    %70 = arith.addf %64, %69 : vector<8x800xf32>
    %c0_64 = arith.constant 0 : index
    %c0_65 = arith.constant 0 : index
    %c110 = arith.constant 110 : index
    %71 = vector.load %arg1[%c0_64, %c0_65, %c110] : memref<1x4x1100xf32, #tpu.memory_space<vmem>>, vector<1x4x800xf32>
    %72 = vector.shape_cast %71 : vector<1x4x800xf32> to vector<4x800xf32>
    %c12_66 = arith.constant 12 : index
    %c0_67 = arith.constant 0 : index
    %c0_68 = arith.constant 0 : index
    %73 = vector.load %arg2[%c12_66, %c0_67, %c0_68] : memref<27x8x4xf32, #tpu.memory_space<vmem>>, vector<1x8x4xf32>
    %74 = vector.shape_cast %73 : vector<1x8x4xf32> to vector<8x4xf32>
    %cst_69 = arith.constant dense<0.000000e+00> : vector<8x800xf32>
    %75 = tpu.matmul %74, %72, %cst_69 {dimension_numbers = #tpu.dot_dimension_numbers<[1], [0], [0], [1], [0, 0, 1, 1], [], []>} : vector<8x4xf32>, vector<4x800xf32>, vector<8x800xf32> -> vector<8x800xf32>
    %76 = arith.addf %70, %75 : vector<8x800xf32>
    %c0_70 = arith.constant 0 : index
    %c0_71 = arith.constant 0 : index
    %c111 = arith.constant 111 : index
    %77 = vector.load %arg1[%c0_70, %c0_71, %c111] : memref<1x4x1100xf32, #tpu.memory_space<vmem>>, vector<1x4x800xf32>
    %78 = vector.shape_cast %77 : vector<1x4x800xf32> to vector<4x800xf32>
    %c13 = arith.constant 13 : index
    %c0_72 = arith.constant 0 : index
    %c0_73 = arith.constant 0 : index
    %79 = vector.load %arg2[%c13, %c0_72, %c0_73] : memref<27x8x4xf32, #tpu.memory_space<vmem>>, vector<1x8x4xf32>
    %80 = vector.shape_cast %79 : vector<1x8x4xf32> to vector<8x4xf32>
    %cst_74 = arith.constant dense<0.000000e+00> : vector<8x800xf32>
    %81 = tpu.matmul %80, %78, %cst_74 {dimension_numbers = #tpu.dot_dimension_numbers<[1], [0], [0], [1], [0, 0, 1, 1], [], []>} : vector<8x4xf32>, vector<4x800xf32>, vector<8x800xf32> -> vector<8x800xf32>
    %82 = arith.addf %76, %81 : vector<8x800xf32>
    %c0_75 = arith.constant 0 : index
    %c0_76 = arith.constant 0 : index
    %c112 = arith.constant 112 : index
    %83 = vector.load %arg1[%c0_75, %c0_76, %c112] : memref<1x4x1100xf32, #tpu.memory_space<vmem>>, vector<1x4x800xf32>
    %84 = vector.shape_cast %83 : vector<1x4x800xf32> to vector<4x800xf32>
    %c14 = arith.constant 14 : index
    %c0_77 = arith.constant 0 : index
    %c0_78 = arith.constant 0 : index
    %85 = vector.load %arg2[%c14, %c0_77, %c0_78] : memref<27x8x4xf32, #tpu.memory_space<vmem>>, vector<1x8x4xf32>
    %86 = vector.shape_cast %85 : vector<1x8x4xf32> to vector<8x4xf32>
    %cst_79 = arith.constant dense<0.000000e+00> : vector<8x800xf32>
    %87 = tpu.matmul %86, %84, %cst_79 {dimension_numbers = #tpu.dot_dimension_numbers<[1], [0], [0], [1], [0, 0, 1, 1], [], []>} : vector<8x4xf32>, vector<4x800xf32>, vector<8x800xf32> -> vector<8x800xf32>
    %88 = arith.addf %82, %87 : vector<8x800xf32>
    %c0_80 = arith.constant 0 : index
    %c0_81 = arith.constant 0 : index
    %c120 = arith.constant 120 : index
    %89 = vector.load %arg1[%c0_80, %c0_81, %c120] : memref<1x4x1100xf32, #tpu.memory_space<vmem>>, vector<1x4x800xf32>
    %90 = vector.shape_cast %89 : vector<1x4x800xf32> to vector<4x800xf32>
    %c15 = arith.constant 15 : index
    %c0_82 = arith.constant 0 : index
    %c0_83 = arith.constant 0 : index
    %91 = vector.load %arg2[%c15, %c0_82, %c0_83] : memref<27x8x4xf32, #tpu.memory_space<vmem>>, vector<1x8x4xf32>
    %92 = vector.shape_cast %91 : vector<1x8x4xf32> to vector<8x4xf32>
    %cst_84 = arith.constant dense<0.000000e+00> : vector<8x800xf32>
    %93 = tpu.matmul %92, %90, %cst_84 {dimension_numbers = #tpu.dot_dimension_numbers<[1], [0], [0], [1], [0, 0, 1, 1], [], []>} : vector<8x4xf32>, vector<4x800xf32>, vector<8x800xf32> -> vector<8x800xf32>
    %94 = arith.addf %88, %93 : vector<8x800xf32>
    %c0_85 = arith.constant 0 : index
    %c0_86 = arith.constant 0 : index
    %c121 = arith.constant 121 : index
    %95 = vector.load %arg1[%c0_85, %c0_86, %c121] : memref<1x4x1100xf32, #tpu.memory_space<vmem>>, vector<1x4x800xf32>
    %96 = vector.shape_cast %95 : vector<1x4x800xf32> to vector<4x800xf32>
    %c16 = arith.constant 16 : index
    %c0_87 = arith.constant 0 : index
    %c0_88 = arith.constant 0 : index
    %97 = vector.load %arg2[%c16, %c0_87, %c0_88] : memref<27x8x4xf32, #tpu.memory_space<vmem>>, vector<1x8x4xf32>
    %98 = vector.shape_cast %97 : vector<1x8x4xf32> to vector<8x4xf32>
    %cst_89 = arith.constant dense<0.000000e+00> : vector<8x800xf32>
    %99 = tpu.matmul %98, %96, %cst_89 {dimension_numbers = #tpu.dot_dimension_numbers<[1], [0], [0], [1], [0, 0, 1, 1], [], []>} : vector<8x4xf32>, vector<4x800xf32>, vector<8x800xf32> -> vector<8x800xf32>
    %100 = arith.addf %94, %99 : vector<8x800xf32>
    %c0_90 = arith.constant 0 : index
    %c0_91 = arith.constant 0 : index
    %c122 = arith.constant 122 : index
    %101 = vector.load %arg1[%c0_90, %c0_91, %c122] : memref<1x4x1100xf32, #tpu.memory_space<vmem>>, vector<1x4x800xf32>
    %102 = vector.shape_cast %101 : vector<1x4x800xf32> to vector<4x800xf32>
    %c17 = arith.constant 17 : index
    %c0_92 = arith.constant 0 : index
    %c0_93 = arith.constant 0 : index
    %103 = vector.load %arg2[%c17, %c0_92, %c0_93] : memref<27x8x4xf32, #tpu.memory_space<vmem>>, vector<1x8x4xf32>
    %104 = vector.shape_cast %103 : vector<1x8x4xf32> to vector<8x4xf32>
    %cst_94 = arith.constant dense<0.000000e+00> : vector<8x800xf32>
    %105 = tpu.matmul %104, %102, %cst_94 {dimension_numbers = #tpu.dot_dimension_numbers<[1], [0], [0], [1], [0, 0, 1, 1], [], []>} : vector<8x4xf32>, vector<4x800xf32>, vector<8x800xf32> -> vector<8x800xf32>
    %106 = arith.addf %100, %105 : vector<8x800xf32>
    %c0_95 = arith.constant 0 : index
    %c0_96 = arith.constant 0 : index
    %c200 = arith.constant 200 : index
    %107 = vector.load %arg1[%c0_95, %c0_96, %c200] : memref<1x4x1100xf32, #tpu.memory_space<vmem>>, vector<1x4x800xf32>
    %108 = vector.shape_cast %107 : vector<1x4x800xf32> to vector<4x800xf32>
    %c18 = arith.constant 18 : index
    %c0_97 = arith.constant 0 : index
    %c0_98 = arith.constant 0 : index
    %109 = vector.load %arg2[%c18, %c0_97, %c0_98] : memref<27x8x4xf32, #tpu.memory_space<vmem>>, vector<1x8x4xf32>
    %110 = vector.shape_cast %109 : vector<1x8x4xf32> to vector<8x4xf32>
    %cst_99 = arith.constant dense<0.000000e+00> : vector<8x800xf32>
    %111 = tpu.matmul %110, %108, %cst_99 {dimension_numbers = #tpu.dot_dimension_numbers<[1], [0], [0], [1], [0, 0, 1, 1], [], []>} : vector<8x4xf32>, vector<4x800xf32>, vector<8x800xf32> -> vector<8x800xf32>
    %112 = arith.addf %106, %111 : vector<8x800xf32>
    %c0_100 = arith.constant 0 : index
    %c0_101 = arith.constant 0 : index
    %c201 = arith.constant 201 : index
    %113 = vector.load %arg1[%c0_100, %c0_101, %c201] : memref<1x4x1100xf32, #tpu.memory_space<vmem>>, vector<1x4x800xf32>
    %114 = vector.shape_cast %113 : vector<1x4x800xf32> to vector<4x800xf32>
    %c19 = arith.constant 19 : index
    %c0_102 = arith.constant 0 : index
    %c0_103 = arith.constant 0 : index
    %115 = vector.load %arg2[%c19, %c0_102, %c0_103] : memref<27x8x4xf32, #tpu.memory_space<vmem>>, vector<1x8x4xf32>
    %116 = vector.shape_cast %115 : vector<1x8x4xf32> to vector<8x4xf32>
    %cst_104 = arith.constant dense<0.000000e+00> : vector<8x800xf32>
    %117 = tpu.matmul %116, %114, %cst_104 {dimension_numbers = #tpu.dot_dimension_numbers<[1], [0], [0], [1], [0, 0, 1, 1], [], []>} : vector<8x4xf32>, vector<4x800xf32>, vector<8x800xf32> -> vector<8x800xf32>
    %118 = arith.addf %112, %117 : vector<8x800xf32>
    %c0_105 = arith.constant 0 : index
    %c0_106 = arith.constant 0 : index
    %c202 = arith.constant 202 : index
    %119 = vector.load %arg1[%c0_105, %c0_106, %c202] : memref<1x4x1100xf32, #tpu.memory_space<vmem>>, vector<1x4x800xf32>
    %120 = vector.shape_cast %119 : vector<1x4x800xf32> to vector<4x800xf32>
    %c20_107 = arith.constant 20 : index
    %c0_108 = arith.constant 0 : index
    %c0_109 = arith.constant 0 : index
    %121 = vector.load %arg2[%c20_107, %c0_108, %c0_109] : memref<27x8x4xf32, #tpu.memory_space<vmem>>, vector<1x8x4xf32>
    %122 = vector.shape_cast %121 : vector<1x8x4xf32> to vector<8x4xf32>
    %cst_110 = arith.constant dense<0.000000e+00> : vector<8x800xf32>
    %123 = tpu.matmul %122, %120, %cst_110 {dimension_numbers = #tpu.dot_dimension_numbers<[1], [0], [0], [1], [0, 0, 1, 1], [], []>} : vector<8x4xf32>, vector<4x800xf32>, vector<8x800xf32> -> vector<8x800xf32>
    %124 = arith.addf %118, %123 : vector<8x800xf32>
    %c0_111 = arith.constant 0 : index
    %c0_112 = arith.constant 0 : index
    %c210 = arith.constant 210 : index
    %125 = vector.load %arg1[%c0_111, %c0_112, %c210] : memref<1x4x1100xf32, #tpu.memory_space<vmem>>, vector<1x4x800xf32>
    %126 = vector.shape_cast %125 : vector<1x4x800xf32> to vector<4x800xf32>
    %c21_113 = arith.constant 21 : index
    %c0_114 = arith.constant 0 : index
    %c0_115 = arith.constant 0 : index
    %127 = vector.load %arg2[%c21_113, %c0_114, %c0_115] : memref<27x8x4xf32, #tpu.memory_space<vmem>>, vector<1x8x4xf32>
    %128 = vector.shape_cast %127 : vector<1x8x4xf32> to vector<8x4xf32>
    %cst_116 = arith.constant dense<0.000000e+00> : vector<8x800xf32>
    %129 = tpu.matmul %128, %126, %cst_116 {dimension_numbers = #tpu.dot_dimension_numbers<[1], [0], [0], [1], [0, 0, 1, 1], [], []>} : vector<8x4xf32>, vector<4x800xf32>, vector<8x800xf32> -> vector<8x800xf32>
    %130 = arith.addf %124, %129 : vector<8x800xf32>
    %c0_117 = arith.constant 0 : index
    %c0_118 = arith.constant 0 : index
    %c211 = arith.constant 211 : index
    %131 = vector.load %arg1[%c0_117, %c0_118, %c211] : memref<1x4x1100xf32, #tpu.memory_space<vmem>>, vector<1x4x800xf32>
    %132 = vector.shape_cast %131 : vector<1x4x800xf32> to vector<4x800xf32>
    %c22_119 = arith.constant 22 : index
    %c0_120 = arith.constant 0 : index
    %c0_121 = arith.constant 0 : index
    %133 = vector.load %arg2[%c22_119, %c0_120, %c0_121] : memref<27x8x4xf32, #tpu.memory_space<vmem>>, vector<1x8x4xf32>
    %134 = vector.shape_cast %133 : vector<1x8x4xf32> to vector<8x4xf32>
    %cst_122 = arith.constant dense<0.000000e+00> : vector<8x800xf32>
    %135 = tpu.matmul %134, %132, %cst_122 {dimension_numbers = #tpu.dot_dimension_numbers<[1], [0], [0], [1], [0, 0, 1, 1], [], []>} : vector<8x4xf32>, vector<4x800xf32>, vector<8x800xf32> -> vector<8x800xf32>
    %136 = arith.addf %130, %135 : vector<8x800xf32>
    %c0_123 = arith.constant 0 : index
    %c0_124 = arith.constant 0 : index
    %c212 = arith.constant 212 : index
    %137 = vector.load %arg1[%c0_123, %c0_124, %c212] : memref<1x4x1100xf32, #tpu.memory_space<vmem>>, vector<1x4x800xf32>
    %138 = vector.shape_cast %137 : vector<1x4x800xf32> to vector<4x800xf32>
    %c23 = arith.constant 23 : index
    %c0_125 = arith.constant 0 : index
    %c0_126 = arith.constant 0 : index
    %139 = vector.load %arg2[%c23, %c0_125, %c0_126] : memref<27x8x4xf32, #tpu.memory_space<vmem>>, vector<1x8x4xf32>
    %140 = vector.shape_cast %139 : vector<1x8x4xf32> to vector<8x4xf32>
    %cst_127 = arith.constant dense<0.000000e+00> : vector<8x800xf32>
    %141 = tpu.matmul %140, %138, %cst_127 {dimension_numbers = #tpu.dot_dimension_numbers<[1], [0], [0], [1], [0, 0, 1, 1], [], []>} : vector<8x4xf32>, vector<4x800xf32>, vector<8x800xf32> -> vector<8x800xf32>
    %142 = arith.addf %136, %141 : vector<8x800xf32>
    %c0_128 = arith.constant 0 : index
    %c0_129 = arith.constant 0 : index
    %c220 = arith.constant 220 : index
    %143 = vector.load %arg1[%c0_128, %c0_129, %c220] : memref<1x4x1100xf32, #tpu.memory_space<vmem>>, vector<1x4x800xf32>
    %144 = vector.shape_cast %143 : vector<1x4x800xf32> to vector<4x800xf32>
    %c24 = arith.constant 24 : index
    %c0_130 = arith.constant 0 : index
    %c0_131 = arith.constant 0 : index
    %145 = vector.load %arg2[%c24, %c0_130, %c0_131] : memref<27x8x4xf32, #tpu.memory_space<vmem>>, vector<1x8x4xf32>
    %146 = vector.shape_cast %145 : vector<1x8x4xf32> to vector<8x4xf32>
    %cst_132 = arith.constant dense<0.000000e+00> : vector<8x800xf32>
    %147 = tpu.matmul %146, %144, %cst_132 {dimension_numbers = #tpu.dot_dimension_numbers<[1], [0], [0], [1], [0, 0, 1, 1], [], []>} : vector<8x4xf32>, vector<4x800xf32>, vector<8x800xf32> -> vector<8x800xf32>
    %148 = arith.addf %142, %147 : vector<8x800xf32>
    %c0_133 = arith.constant 0 : index
    %c0_134 = arith.constant 0 : index
    %c221 = arith.constant 221 : index
    %149 = vector.load %arg1[%c0_133, %c0_134, %c221] : memref<1x4x1100xf32, #tpu.memory_space<vmem>>, vector<1x4x800xf32>
    %150 = vector.shape_cast %149 : vector<1x4x800xf32> to vector<4x800xf32>
    %c25 = arith.constant 25 : index
    %c0_135 = arith.constant 0 : index
    %c0_136 = arith.constant 0 : index
    %151 = vector.load %arg2[%c25, %c0_135, %c0_136] : memref<27x8x4xf32, #tpu.memory_space<vmem>>, vector<1x8x4xf32>
    %152 = vector.shape_cast %151 : vector<1x8x4xf32> to vector<8x4xf32>
    %cst_137 = arith.constant dense<0.000000e+00> : vector<8x800xf32>
    %153 = tpu.matmul %152, %150, %cst_137 {dimension_numbers = #tpu.dot_dimension_numbers<[1], [0], [0], [1], [0, 0, 1, 1], [], []>} : vector<8x4xf32>, vector<4x800xf32>, vector<8x800xf32> -> vector<8x800xf32>
    %154 = arith.addf %148, %153 : vector<8x800xf32>
    %c0_138 = arith.constant 0 : index
    %c0_139 = arith.constant 0 : index
    %c222 = arith.constant 222 : index
    %155 = vector.load %arg1[%c0_138, %c0_139, %c222] : memref<1x4x1100xf32, #tpu.memory_space<vmem>>, vector<1x4x800xf32>
    %156 = vector.shape_cast %155 : vector<1x4x800xf32> to vector<4x800xf32>
    %c26 = arith.constant 26 : index
    %c0_140 = arith.constant 0 : index
    %c0_141 = arith.constant 0 : index
    %157 = vector.load %arg2[%c26, %c0_140, %c0_141] : memref<27x8x4xf32, #tpu.memory_space<vmem>>, vector<1x8x4xf32>
    %158 = vector.shape_cast %157 : vector<1x8x4xf32> to vector<8x4xf32>
    %cst_142 = arith.constant dense<0.000000e+00> : vector<8x800xf32>
    %159 = tpu.matmul %158, %156, %cst_142 {dimension_numbers = #tpu.dot_dimension_numbers<[1], [0], [0], [1], [0, 0, 1, 1], [], []>} : vector<8x4xf32>, vector<4x800xf32>, vector<8x800xf32> -> vector<8x800xf32>
    %160 = arith.addf %154, %159 : vector<8x800xf32>
    %c0_143 = arith.constant 0 : index
    %c0_144 = arith.constant 0 : index
    %161 = vector.load %arg3[%c0_143, %c0_144] : memref<8x1xf32, #tpu.memory_space<vmem>>, vector<8x1xf32>
    %162 = vector.broadcast %161 : vector<8x1xf32> to vector<8x800xf32>
    %163 = arith.addf %160, %162 : vector<8x800xf32>
    %c0_145 = arith.constant 0 : index
    %c0_146 = arith.constant 0 : index
    %164 = vector.load %arg6[%c0_145, %c0_146] : memref<1x800xf32, #tpu.memory_space<vmem>>, vector<1x800xf32>
    %165 = vector.broadcast %164 : vector<1x800xf32> to vector<8x800xf32>
    %166 = arith.mulf %163, %165 : vector<8x800xf32>
    %cst_147 = arith.constant dense<0.000000e+00> : vector<8xf32>
    %167 = vector.multi_reduction <add>, %166, %cst_147 [1] : vector<8x800xf32> to vector<8xf32>
    %168 = vector.shape_cast %167 : vector<8xf32> to vector<8x1xf32>
    %169 = arith.mulf %166, %166 : vector<8x800xf32>
    %cst_148 = arith.constant dense<0.000000e+00> : vector<8xf32>
    %170 = vector.multi_reduction <add>, %169, %cst_148 [1] : vector<8x800xf32> to vector<8xf32>
    %171 = vector.shape_cast %170 : vector<8xf32> to vector<8x1xf32>
    %cst_149 = arith.constant 0.001953125 : f32
    %172 = vector.broadcast %cst_149 : f32 to vector<8x1xf32>
    %173 = arith.mulf %168, %172 : vector<8x1xf32>
    %cst_150 = arith.constant 0.001953125 : f32
    %174 = vector.broadcast %cst_150 : f32 to vector<8x1xf32>
    %175 = arith.mulf %171, %174 : vector<8x1xf32>
    %176 = arith.mulf %173, %173 : vector<8x1xf32>
    %177 = arith.subf %175, %176 : vector<8x1xf32>
    %cst_151 = arith.constant 9.99999974E-6 : f32
    %178 = vector.broadcast %cst_151 : f32 to vector<8x1xf32>
    %179 = arith.addf %177, %178 : vector<8x1xf32>
    %180 = math.rsqrt %179 : vector<8x1xf32>
    %181 = vector.broadcast %173 : vector<8x1xf32> to vector<8x800xf32>
    %182 = arith.subf %163, %181 : vector<8x800xf32>
    %183 = vector.broadcast %180 : vector<8x1xf32> to vector<8x800xf32>
    %184 = arith.mulf %182, %183 : vector<8x800xf32>
    %c0_152 = arith.constant 0 : index
    %c0_153 = arith.constant 0 : index
    %185 = vector.load %arg4[%c0_152, %c0_153] : memref<8x1xf32, #tpu.memory_space<vmem>>, vector<8x1xf32>
    %186 = vector.broadcast %185 : vector<8x1xf32> to vector<8x800xf32>
    %187 = arith.mulf %184, %186 : vector<8x800xf32>
    %c0_154 = arith.constant 0 : index
    %c0_155 = arith.constant 0 : index
    %188 = vector.load %arg5[%c0_154, %c0_155] : memref<8x1xf32, #tpu.memory_space<vmem>>, vector<8x1xf32>
    %189 = vector.broadcast %188 : vector<8x1xf32> to vector<8x800xf32>
    %190 = arith.addf %187, %189 : vector<8x800xf32>
    %cst_156 = arith.constant 0.000000e+00 : f32
    %191 = vector.broadcast %cst_156 : f32 to vector<8x800xf32>
    %192 = arith.cmpf oge, %190, %191 : vector<8x800xf32>
    %cst_157 = arith.constant 0.00999999977 : f32
    %193 = vector.broadcast %cst_157 : f32 to vector<8x800xf32>
    %194 = arith.mulf %193, %190 : vector<8x800xf32>
    %195 = arith.select %192, %190, %194 : vector<8x800xi1>, vector<8x800xf32>
    %c0_158 = arith.constant 0 : index
    %c0_159 = arith.constant 0 : index
    %c0_160 = arith.constant 0 : index
    %196 = vector.load %arg7[%c0_158, %c0_159, %c0_160] : memref<1x8x800xf32, #tpu.memory_space<vmem>>, vector<1x8x800xf32>
    %197 = vector.shape_cast %196 : vector<1x8x800xf32> to vector<8x800xf32>
    %198 = vector.shape_cast %195 : vector<8x800xf32> to vector<1x8x800xf32>
    tpu.vector_store %arg7[%c0_158, %c0_159, %c0_160], %198 {strides = array<i32>} : memref<1x8x800xf32, #tpu.memory_space<vmem>>, vector<1x8x800xf32>,
    return
  }
  func.func @transform_0(%arg0: i32) -> (i32, i32, i32) {
    %c0_i32 = arith.constant 0 : i32
    %c0_i32_0 = arith.constant 0 : i32
    %c0_i32_1 = arith.constant 0 : i32
    return %arg0, %c0_i32, %c0_i32_0 : i32, i32, i32
  }
  func.func @transform_1(%arg0: i32) -> (i32, i32, i32) {
    %c0_i32 = arith.constant 0 : i32
    %c0_i32_0 = arith.constant 0 : i32
    %c0_i32_1 = arith.constant 0 : i32
    %c0_i32_2 = arith.constant 0 : i32
    return %c0_i32, %c0_i32_0, %c0_i32_1 : i32, i32, i32
  }
  func.func @transform_2(%arg0: i32) -> (i32, i32) {
    %c0_i32 = arith.constant 0 : i32
    %c0_i32_0 = arith.constant 0 : i32
    %c0_i32_1 = arith.constant 0 : i32
    return %c0_i32, %c0_i32_0 : i32, i32
  }
  func.func @transform_3(%arg0: i32) -> (i32, i32) {
    %c0_i32 = arith.constant 0 : i32
    %c0_i32_0 = arith.constant 0 : i32
    %c0_i32_1 = arith.constant 0 : i32
    return %c0_i32, %c0_i32_0 : i32, i32
  }
  func.func @transform_4(%arg0: i32) -> (i32, i32) {
    %c0_i32 = arith.constant 0 : i32
    %c0_i32_0 = arith.constant 0 : i32
    %c0_i32_1 = arith.constant 0 : i32
    return %c0_i32, %c0_i32_0 : i32, i32
  }
  func.func @transform_5(%arg0: i32) -> (i32, i32) {
    %c0_i32 = arith.constant 0 : i32
    %c0_i32_0 = arith.constant 0 : i32
    %c0_i32_1 = arith.constant 0 : i32
    return %c0_i32, %c0_i32_0 : i32, i32
  }
  func.func @transform_6(%arg0: i32) -> (i32, i32, i32) {
    %c0_i32 = arith.constant 0 : i32
    %c0_i32_0 = arith.constant 0 : i32
    %c0_i32_1 = arith.constant 0 : i32
    return %arg0, %c0_i32, %c0_i32_0 : i32, i32, i32
  }
}

</mosaic_0001>

<bundles_post_ra>
// kernel: conv3d_forward.1
= control target key start
LH: loop header
LB: loop body
LE: loop exit
PB: predicated region body
PF: predicated region fallthrough
CT: control target
= control target key end

     0   :  { %s10464_s21 = smov 0   ;;  %s11595_s0 = inlined_call_operand.vmem [shape: f32[2,4,1100], index: 0, kind: input, shape index: {}]   ;;  %s11596_s1 = inlined_call_operand.vmem [shape: f32[27,8,4], index: 1, kind: input, shape index: {}]   ;;  %s11597_s2 = inlined_call_operand.vmem [shape: f32[8,1], index: 2, kind: input, shape index: {}]   ;;  %s11598_s3 = inlined_call_operand.vmem [shape: f32[8,1], index: 3, kind: input, shape index: {}]   ;;  %s11599_s4 = inlined_call_operand.vmem [shape: f32[8,1], index: 4, kind: input, shape index: {}]   ;;  %s11600_s5 = inlined_call_operand.vmem [shape: f32[1,800], index: 5, kind: input, shape index: {}]   ;;  %s11601_s6 = inlined_call_operand.vmem [shape: f32[2,8,800], index: 6, kind: output, shape index: {}]  }
   0x1 LB: > { %s9662_s22 = sadd.s32 4294967295, %s10398_s21   ;;  %p9666_p0 = scmp.ge.s32.totalorder %s10398_s21, 1  ;;  %s10398_s21 = sphi %s10464_s21, %s16_s21  }
   0x2   : > { %p212_p1 = scmp.lt.s32.totalorder %s10398_s21, 3 }
   0x4   : > { %p213_p2 = pnand %p9666_p0, %p212_p1 }
   0x5   : > { %p242_p3 = scmp.lt.s32.totalorder (!%p213_p2), %s9662_s22, 1  ;;  %v10400_v0 = vmov (!%p213_p2), 0.0   ;;  %s10401_s27 = smov (!%p213_p2), 127   ;;  %vm280_vm0 = vcmask (!%p213_p2), 1039360   ;;  %vm291_vm1 = vcmask (!%p213_p2), 1043456   ;;  %v9669_v22 = vld [vmem:[%s11596_s1 + $0x8] sm:$0xff] (!%p213_p2) }
   0x6   : > { %216 = sbr.rel (%p213_p2) target bundleno = 917 (0x395), region = 44  ;;  %441 = vmatprep.mubr.f32.mxu1 (!%p213_p2), %v10400_v0  ;;  %370 = vmatprep.mubr.f32.mxu0 (!%p213_p2), %v10400_v0  ;;  %s10402_s28 = smov (!%p213_p2), 126   ;;  %vm287_vm2 = vcmask (!%p213_p2), 31744   ;;  %vm10410_vm3 = vmmov (!%p213_p2), 0   ;;  %v256_v34 = vld [vmem:[%s11596_s1] sm:$0xff] (!%p213_p2)  ;;  %vm916_vm4 = vcmask (!%p213_p2), 1031168  }
   0x7   : > { %s10403_s29 = smov (!%p213_p2), 118   ;;  %s10404_s30 = smov (!%p213_p2), 117   ;;  %v9692_v45 = vld [vmem:[%s11596_s1 + $0x10] sm:$0xff] (!%p213_p2)  ;;  %vm1257_vm5 = vcmask (!%p213_p2), 965632   ;;  %v9704_v56 = vld [vmem:[%s11596_s1 + $0x18] sm:$0xff] (!%p213_p2)  ;;  %vm1598_vm6 = vcmask (!%p213_p2), 957440  }
   0x8   : > { %s10405_s7 = smov (!%p213_p2), 116   ;;  %s10406_s8 = smov (!%p213_p2), 108   ;;  %vm1939_vm7 = vcmask (!%p213_p2), 949248   ;;  %vm2280_vm8 = vcmask (!%p213_p2), 883712   ;;  %vm2621_vm9 = vcmask (!%p213_p2), 875520   ;;  %vm2962_vm10 = vcmask (!%p213_p2), 867328  }
   0x9   : > { %s10407_s9 = smov (!%p213_p2), 107   ;;  %s10408_s10 = smov (!%p213_p2), 106   ;;  %vm3306_vm11 = vcmask (!%p213_p2), 228352   ;;  %vm3651_vm12 = vcmask (!%p213_p2), 220160   ;;  %vm3996_vm13 = vcmask (!%p213_p2), 211968   ;;  %vm4341_vm14 = vcmask (!%p213_p2), 146432  }
   0xa   : > { %s10409_s11 = smov (!%p213_p2), 28   ;;  %s10411_s14 = smov (!%p213_p2), 27   ;;  %vm4686_vm15 = vcmask (!%p213_p2), 138240  }
   0xb   : > { %s10412_s19 = smov (!%p213_p2), 26   ;;  %s10413_s24 = smov (!%p213_p2), 18  }
   0xc   : > { %s10416_s12 = smov (!%p213_p2), 8   ;;  %s10417_s15 = smov (!%p213_p2), 7  }
   0xd   : > { %s11603_s22 = smov (!%p242_p3, %s9662_s22), 1  ;;  %s10418_s18 = smov 6  }
   0xe   : > { %s10339_s23 = smul.u32 36, %s11603_s22  ;;  %s10424_s13 = smov 44  }
   0xf   : > { %s10425_s16 = smov 36  }
  0x10   : > { %s10480_s26 = scalar_lea.vmem %s11595_s0, %s10339_s23  ;;  %s10419_s23 = smov 56  }
  0x11   : > { %v10483_v1 = vld [vmem:[%s10480_s26 + $0x8] sm:$0xff]  ;;  %v10486_v2 = vld [vmem:[%s10480_s26] sm:$0xff]  ;;  %v10495_v4 = vld [vmem:[%s10480_s26 + $0x10] sm:$0xff] }
  0x12   : > { %270 = vrot.lane.b32.xlu0 %v10483_v1, %s10401_s27  ;;  %266 = vrot.lane.b32.xlu1 %v10486_v2, %s10401_s27  ;;  %v10492_v3 = vcombine.high %v10483_v1, %v10483_v1  ;;  %v10501_v5 = vcombine.high %v10495_v4, %v10495_v4  ;;  %v10505_v6 = vcombine.high %v10486_v2, %v10486_v2  ;;  %v10510_v7 = vld [vmem:[%s10480_s26 + $0x18] sm:$0xf] }
  0x13   : > { %v892_v8 = vld [vmem:[%s10480_s26 + $0x18] sm:$0xf] }
  0x14   : > { %v1233_v9 = vld [vmem:[%s10480_s26 + $0x18] sm:$0xf] }
  0x15   : > { %v1574_v10 = vld [vmem:[%s10480_s26 + $0x18] sm:$0xf] }
  0x16   : > { %274 = vrot.lane.b32.xlu0 %v10495_v4, %s10401_s27  ;;  %272 = vrot.lane.b32.xlu1 %v10492_v3, %s10401_s27  ;;  %v1915_v11 = vld [vmem:[%s10480_s26 + $0x18] sm:$0xf] }
  0x17   : > { %v2256_v12 = vld [vmem:[%s10480_s26 + $0x18] sm:$0xf] }
  0x18   : > { %v2597_v13 = vld [vmem:[%s10480_s26 + $0x18] sm:$0xf] }
  0x19   : > { %v2938_v14 = vld [vmem:[%s10480_s26 + $0x18] sm:$0xf] }
  0x1a   : > { %276 = vrot.lane.b32.xlu1 %v10501_v5, %s10401_s27  ;;  %268 = vrot.lane.b32.xlu0 %v10505_v6, %s10401_s27  ;;  %v10571_v17 = vld [vmem:[%s10480_s26 + $0x18] sm:$0xff] }
  0x1b   : > { %v10583_v23 = vcombine.high %v10571_v17, %v10571_v17 }
  0x1e   : > { %904 = vrot.lane.b32.xlu1 %v10505_v6, %s10402_s28  ;;  %278 = vrot.lane.b32.xlu0 %v10510_v7, %s10401_s27  ;;  %s10420_s27 = smov 55  }
  0x22   : > { %902 = vrot.lane.b32.xlu1 %v10486_v2, %s10402_s28  ;;  %906 = vrot.lane.b32.xlu0 %v10483_v1, %s10402_s28 }
  0x26   : > { %910 = vrot.lane.b32.xlu1 %v10495_v4, %s10402_s28  ;;  %908 = vrot.lane.b32.xlu0 %v10492_v3, %s10402_s28 }
  0x2a   : > { %914 = vrot.lane.b32.xlu1 %v892_v8, %s10402_s28  ;;  %912 = vrot.lane.b32.xlu0 %v10501_v5, %s10402_s28 }
  0x2e   : > { %1247 = vrot.lane.b32.xlu1 %v10483_v1, %s10403_s29  ;;  %1245 = vrot.lane.b32.xlu0 %v10505_v6, %s10403_s29 }
  0x32   : > { %1249 = vrot.lane.b32.xlu1 %v10492_v3, %s10403_s29  ;;  %1243 = vrot.lane.b32.xlu0 %v10486_v2, %s10403_s29 }
  0x36   : > { %1253 = vrot.lane.b32.xlu1 %v10501_v5, %s10403_s29  ;;  %1251 = vrot.lane.b32.xlu0 %v10495_v4, %s10403_s29 }
  0x3a   : > { %1586 = vrot.lane.b32.xlu1 %v10505_v6, %s10404_s30  ;;  %1255 = vrot.lane.b32.xlu0 %v1233_v9, %s10403_s29  ;;  %s10340_s29 = smul.u32 56, %s11603_s22 }
  0x3e   : > { %1584 = vrot.lane.b32.xlu1 %v10486_v2, %s10404_s30  ;;  %1588 = vrot.lane.b32.xlu0 %v10483_v1, %s10404_s30 }
  0x42   : > { %1592 = vrot.lane.b32.xlu1 %v10495_v4, %s10404_s30  ;;  %1590 = vrot.lane.b32.xlu0 %v10492_v3, %s10404_s30 }
  0x46   : > { %1596 = vrot.lane.b32.xlu1 %v1574_v10, %s10404_s30  ;;  %1594 = vrot.lane.b32.xlu0 %v10501_v5, %s10404_s30  ;;  %s10414_s30 = smov 17  }
  0x4a   : > { %1929 = vrot.lane.b32.xlu1 %v10483_v1, %s10405_s7  ;;  %1927 = vrot.lane.b32.xlu0 %v10505_v6, %s10405_s7 }
  0x4e   : > { %1931 = vrot.lane.b32.xlu1 %v10492_v3, %s10405_s7  ;;  %1925 = vrot.lane.b32.xlu0 %v10486_v2, %s10405_s7 }
  0x52   : > { %1935 = vrot.lane.b32.xlu1 %v10501_v5, %s10405_s7  ;;  %1933 = vrot.lane.b32.xlu0 %v10495_v4, %s10405_s7 }
  0x56   : > { %2268 = vrot.lane.b32.xlu1 %v10505_v6, %s10406_s8  ;;  %1937 = vrot.lane.b32.xlu0 %v1915_v11, %s10405_s7 }
  0x5a   : > { %2266 = vrot.lane.b32.xlu1 %v10486_v2, %s10406_s8  ;;  %2270 = vrot.lane.b32.xlu0 %v10483_v1, %s10406_s8 }
  0x5e   : > { %2274 = vrot.lane.b32.xlu1 %v10495_v4, %s10406_s8  ;;  %2272 = vrot.lane.b32.xlu0 %v10492_v3, %s10406_s8 }
  0x62   : > { %2278 = vrot.lane.b32.xlu1 %v2256_v12, %s10406_s8  ;;  %2276 = vrot.lane.b32.xlu0 %v10501_v5, %s10406_s8  ;;  %v9716_v12 = vld [vmem:[%s11596_s1 + $0x20] sm:$0xff]  ;;  %s251_s8 = scalar_lea.vmem %s11601_s6, %s10340_s29 }
  0x66   : > { %2611 = vrot.lane.b32.xlu1 %v10483_v1, %s10407_s9  ;;  %2609 = vrot.lane.b32.xlu0 %v10505_v6, %s10407_s9 }
  0x6a   : > { %2613 = vrot.lane.b32.xlu1 %v10492_v3, %s10407_s9  ;;  %2607 = vrot.lane.b32.xlu0 %v10486_v2, %s10407_s9 }
  0x6e   : > { %2617 = vrot.lane.b32.xlu1 %v10501_v5, %s10407_s9  ;;  %2615 = vrot.lane.b32.xlu0 %v10495_v4, %s10407_s9 }
  0x72   : > { %2950 = vrot.lane.b32.xlu1 %v10505_v6, %s10408_s10  ;;  %2619 = vrot.lane.b32.xlu0 %v2597_v13, %s10407_s9  ;;  %s10415_s9 = smov 16  }
  0x76   : > { %2948 = vrot.lane.b32.xlu1 %v10486_v2, %s10408_s10  ;;  %2952 = vrot.lane.b32.xlu0 %v10483_v1, %s10408_s10 }
  0x7a   : > { %2956 = vrot.lane.b32.xlu1 %v10495_v4, %s10408_s10  ;;  %2954 = vrot.lane.b32.xlu0 %v10492_v3, %s10408_s10 }
  0x7e   : > { %2960 = vrot.lane.b32.xlu1 %v2938_v14, %s10408_s10  ;;  %2958 = vrot.lane.b32.xlu0 %v10501_v5, %s10408_s10  ;;  %s10423_s10 = smov 45  }
  0x82   : > { %3294 = vrot.lane.b32.xlu1 %v10483_v1, %s10409_s11  ;;  %3292 = vrot.lane.b32.xlu0 %v10505_v6, %s10409_s11 }
  0x84   : > { %v271_v15 = vpop.permute.xlu0 %270  ;;  %v267_v16 = vpop.permute.xlu1 %266 }
  0x86   : > { %3296 = vrot.lane.b32.xlu1 %v10492_v3, %s10409_s11  ;;  %3290 = vrot.lane.b32.xlu0 %v10486_v2, %s10409_s11 }
  0x88   : > { %v275_v18 = vpop.permute.xlu0 %274  ;;  %v273_v19 = vpop.permute.xlu1 %272 }
  0x89   : > { %v284_v20 = vsel %vm280_vm0, %v273_v19, %v275_v18  ;;  %v283_v21 = vsel %vm280_vm0, %v271_v15, %v273_v19 }
  0x8a   : > { %3300 = vrot.lane.b32.xlu1 %v10501_v5, %s10409_s11  ;;  %9673 = vmatprep.subr.msk.mxu1 %vm291_vm1, %v284_v20 }
  0x8b   : > { %3298 = vrot.lane.b32.xlu0 %v10495_v4, %s10409_s11  ;;  %9674 = vmatpush1.msk.msra.mxu1 %vm291_vm1, %v283_v21 }
  0x8c   : > { %v277_v24 = vpop.permute.xlu1 %276  ;;  %v269_v25 = vpop.permute.xlu0 %268  ;;  %9675 = vmatmul.mubr.msk.f32.vlgmr.msra.gmra.mrb[0].mxu1 %vm287_vm2, %v9669_v22  ;;  %10048 = vmatprep.subr.mxu1 %v10400_v0 }
  0x8d   : > { %v282_v26 = vsel %vm280_vm0, %v269_v25, %v271_v15  ;;  %v281_v27 = vsel %vm280_vm0, %v267_v16, %v269_v25  ;;  %10050 = vmatprep.mubr.msk.f32.mxu1 %vm10410_vm3, %v10400_v0  ;;  %v285_v31 = vsel %vm280_vm0, %v275_v18, %v277_v24  ;;  %v9728_v25 = vld [vmem:[%s11596_s1 + $0x28] sm:$0xff] }
  0x8e   : > { %3304 = vrot.lane.b32.xlu1 %v10583_v23, %s10409_s11  ;;  %9670 = vmatprep.subr.msk.mxu0 %vm291_vm1, %v282_v26 }
  0x8f   : > { %3302 = vrot.lane.b32.xlu0 %v10571_v17, %s10409_s11  ;;  %9671 = vmatpush1.msk.msra.mxu0 %vm291_vm1, %v281_v27 }
  0x90   : > { %v905_v28 = vpop.permute.xlu1 %904  ;;  %9672 = vmatmul.mubr.msk.f32.vlgmr.msra.gmra.mrb[0].mxu0 %vm287_vm2, %v9669_v22  ;;  %v279_v29 = vpop.permute.xlu0 %278 }
  0x91   : > { %10049 = vmatpush3.msk.msra.mxu1 %vm291_vm1, %v279_v29  ;;  %v286_v30 = vsel %vm280_vm0, %v277_v24, %v279_v29  ;;  %512 = vmatprep.mubr.f32.mxu0 %v10400_v0  ;;  %vm5031_vm0 = vcmask 130048  }
  0x92   : > { %3639 = vrot.lane.b32.xlu1 %v10483_v1, %s10411_s14  ;;  %9676 = vmatprep.subr.msk.mxu0 %vm291_vm1, %v286_v30 }
  0x93   : > { %3637 = vrot.lane.b32.xlu0 %v10505_v6, %s10411_s14  ;;  %9677 = vmatpush1.msk.msra.mxu0 %vm291_vm1, %v285_v31 }
  0x94   : > { %10051 = vmatmul.mubr.msk.f32.vlgmr.msra.gmra.mrb[2].mxu1 %vm287_vm2, %v9669_v22  ;;  %v903_v32 = vpop.permute.xlu1 %902  ;;  %9678 = vmatmul.mubr.msk.f32.vlgmr.msra.gmra.mrb[2].mxu0 %vm287_vm2, %v9669_v22  ;;  %v907_v33 = vpop.permute.xlu0 %906 }
  0x95   : > { %9681 = vmatprep.subr.msk.mxu0 %vm291_vm1, %v10505_v6  ;;  %9684 = vmatprep.subr.msk.mxu1 %vm291_vm1, %v10492_v3  ;;  %v918_v37 = vsel %vm916_vm4, %v905_v28, %v907_v33  ;;  %v917_v42 = vsel %vm916_vm4, %v903_v32, %v905_v28 }
  0x96   : > { %3641 = vrot.lane.b32.xlu1 %v10492_v3, %s10411_s14  ;;  %9682 = vmatpush1.msk.msra.mxu0 %vm291_vm1, %v10486_v2 }
  0x97   : > { %3635 = vrot.lane.b32.xlu0 %v10486_v2, %s10411_s14  ;;  %9685 = vmatpush1.msk.msra.mxu1 %vm291_vm1, %v10483_v1 }
  0x98   : > { %741 = vmatprep.mubr.f32.mxu1 %v10400_v0  ;;  %670 = vmatprep.mubr.f32.mxu0 %v10400_v0  ;;  %v911_v35 = vpop.permute.xlu1 %910  ;;  %v909_v36 = vpop.permute.xlu0 %908 }
  0x99   : > { %9686 = vmatmul.mubr.msk.f32.vlgmr.msra.gmra.mrb[0].mxu1 %vm287_vm2, %v256_v34  ;;  %9687 = vmatprep.subr.msk.mxu0 %vm291_vm1, %v10501_v5  ;;  %v920_v38 = vsel %vm916_vm4, %v909_v36, %v911_v35  ;;  %v919_v41 = vsel %vm916_vm4, %v907_v33, %v909_v36 }
  0x9a   : > { %9683 = vmatmul.mubr.msk.f32.vlgmr.msra.gmra.mrb[0].mxu0 %vm287_vm2, %v256_v34  ;;  %10053 = vmatprep.subr.mxu1 %v10400_v0 }
  0x9b   : > { %9688 = vmatpush1.msk.msra.mxu0 %vm291_vm1, %v10495_v4  ;;  %10054 = vmatpush3.msk.msra.mxu1 %vm291_vm1, %v10510_v7 }
  0x9c   : > { %9693 = vmatprep.subr.msk.mxu0 %vm291_vm1, %v918_v37  ;;  %3645 = vrot.lane.b32.xlu1 %v10501_v5, %s10411_s14  ;;  %v915_v39 = vpop.permute.xlu1 %914  ;;  %v913_v40 = vpop.permute.xlu0 %912 }
  0x9d   : > { %3643 = vrot.lane.b32.xlu0 %v10495_v4, %s10411_s14  ;;  %10055 = vmatprep.mubr.msk.f32.mxu1 %vm10410_vm3, %v10400_v0  ;;  %v922_v43 = vsel %vm916_vm4, %v913_v40, %v915_v39  ;;  %v921_v47 = vsel %vm916_vm4, %v911_v35, %v913_v40  ;;  %vm5376_vm4 = vcmask 64512  }
  0x9e   : > { %9696 = vmatprep.subr.msk.mxu1 %vm291_vm1, %v920_v38  ;;  %812 = vmatprep.mubr.f32.mxu0 %v10400_v0  ;;  %v9740_v38 = vld [vmem:[%s11596_s1 + $0x30] sm:$0xff] }
  0x9f   : > { %10056 = vmatmul.mubr.msk.f32.vlgmr.msra.gmra.mrb[4].mxu1 %vm287_vm2, %v256_v34  ;;  %9689 = vmatmul.mubr.msk.f32.vlgmr.msra.gmra.mrb[2].mxu0 %vm287_vm2, %v256_v34 }
  0xa0   : > { %9697 = vmatpush1.msk.msra.mxu1 %vm291_vm1, %v919_v41  ;;  %9694 = vmatpush1.msk.msra.mxu0 %vm291_vm1, %v917_v42  ;;  %v1248_v44 = vpop.permute.xlu1 %1247  ;;  %v1246_v46 = vpop.permute.xlu0 %1245 }
  0xa1   : > { %3649 = vrot.lane.b32.xlu1 %v10583_v23, %s10411_s14  ;;  %3647 = vrot.lane.b32.xlu0 %v10571_v17, %s10411_s14  ;;  %v1259_v48 = vsel %vm1257_vm5, %v1246_v46, %v1248_v44 }
  0xa2   : > { %9699 = vmatprep.subr.msk.mxu0 %vm291_vm1, %v922_v43  ;;  %1004 = vmatprep.mubr.f32.mxu0 %v10400_v0 }
  0xa3   : > { %9695 = vmatmul.mubr.msk.f32.vlgmr.msra.gmra.mrb[0].mxu0 %vm287_vm2, %v9692_v45  ;;  %1075 = vmatprep.mubr.f32.mxu1 %v10400_v0 }
  0xa4   : > { %9700 = vmatpush1.msk.msra.mxu0 %vm291_vm1, %v921_v47  ;;  %10058 = vmatprep.subr.mxu1 %v10400_v0  ;;  %v1250_v49 = vpop.permute.xlu1 %1249  ;;  %v1244_v50 = vpop.permute.xlu0 %1243 }
  0xa5   : > { %9698 = vmatmul.mubr.msk.f32.vlgmr.msra.gmra.mrb[0].mxu1 %vm287_vm2, %v9692_v45  ;;  %3984 = vrot.lane.b32.xlu1 %v10483_v1, %s10412_s19  ;;  %v1258_v51 = vsel %vm1257_vm5, %v1244_v50, %v1246_v46  ;;  %v1260_v55 = vsel %vm1257_vm5, %v1248_v44, %v1250_v49 }
  0xa6   : > { %10059 = vmatpush3.msk.msra.mxu1 %vm291_vm1, %v915_v39  ;;  %3982 = vrot.lane.b32.xlu0 %v10505_v6, %s10412_s19 }
  0xa7   : > { %9705 = vmatprep.subr.msk.mxu0 %vm291_vm1, %v1259_v48  ;;  %1146 = vmatprep.mubr.f32.mxu0 %v10400_v0 }
  0xa8   : > { %9701 = vmatmul.mubr.msk.f32.vlgmr.msra.gmra.mrb[2].mxu0 %vm287_vm2, %v9692_v45  ;;  %v1254_v52 = vpop.permute.xlu1 %1253  ;;  %10060 = vmatprep.mubr.msk.f32.mxu1 %vm10410_vm3, %v10400_v0  ;;  %v1252_v53 = vpop.permute.xlu0 %1251 }
  0xa9   : > { %3986 = vrot.lane.b32.xlu1 %v10492_v3, %s10412_s19  ;;  %9706 = vmatpush1.msk.msra.mxu0 %vm291_vm1, %v1258_v51  ;;  %v1261_v54 = vsel %vm1257_vm5, %v1250_v49, %v1252_v53  ;;  %v1262_v60 = vsel %vm1257_vm5, %v1252_v53, %v1254_v52  ;;  %v9752_v53 = vld [vmem:[%s11596_s1 + $0x38] sm:$0xff] }
  0xaa   : > { %3980 = vrot.lane.b32.xlu0 %v10486_v2, %s10412_s19  ;;  %10061 = vmatmul.mubr.msk.f32.vlgmr.msra.gmra.mrb[6].mxu1 %vm287_vm2, %v9692_v45 }
  0xab   : > { %9708 = vmatprep.subr.msk.mxu1 %vm291_vm1, %v1261_v54  ;;  %1416 = vmatprep.mubr.f32.mxu1 %v10400_v0 }
  0xac   : > { %9709 = vmatpush1.msk.msra.mxu1 %vm291_vm1, %v1260_v55  ;;  %v1587_v57 = vpop.permute.xlu1 %1586  ;;  %v1256_v58 = vpop.permute.xlu0 %1255  ;;  %1345 = vmatprep.mubr.f32.mxu0 %v10400_v0 }
  0xad   : > { %3990 = vrot.lane.b32.xlu1 %v10501_v5, %s10412_s19  ;;  %10063 = vmatprep.subr.mxu1 %v10400_v0  ;;  %v1263_v59 = vsel %vm1257_vm5, %v1254_v52, %v1256_v58  ;;  %vm5721_vm5 = vcmask 56320  }
  0xae   : > { %3988 = vrot.lane.b32.xlu0 %v10495_v4, %s10412_s19  ;;  %9710 = vmatmul.mubr.msk.f32.vlgmr.msra.gmra.mrb[0].mxu1 %vm287_vm2, %v9704_v56 }
  0xaf   : > { %10064 = vmatpush3.msk.msra.mxu1 %vm291_vm1, %v1256_v58  ;;  %9711 = vmatprep.subr.msk.mxu0 %vm291_vm1, %v1263_v59 }
  0xb0   : > { %9707 = vmatmul.mubr.msk.f32.vlgmr.msra.gmra.mrb[0].mxu0 %vm287_vm2, %v9704_v56  ;;  %v1585_v61 = vpop.permute.xlu1 %1584  ;;  %v1589_v62 = vpop.permute.xlu0 %1588  ;;  %10065 = vmatprep.mubr.msk.f32.mxu1 %vm10410_vm3, %v10400_v0 }
  0xb1   : > { %3994 = vrot.lane.b32.xlu1 %v10583_v23, %s10412_s19  ;;  %9712 = vmatpush1.msk.msra.mxu0 %vm291_vm1, %v1262_v60  ;;  %v1600_v63 = vsel %vm1598_vm6, %v1587_v57, %v1589_v62  ;;  %v1599_v7 = vsel %vm1598_vm6, %v1585_v61, %v1587_v57 }
  0xb2   : > { %3992 = vrot.lane.b32.xlu0 %v10571_v17, %s10412_s19  ;;  %1487 = vmatprep.mubr.f32.mxu0 %v10400_v0  ;;  %s10426_s19 = smov 35  }
  0xb3   : > { %9717 = vmatprep.subr.msk.mxu0 %vm291_vm1, %v1600_v63  ;;  %10066 = vmatmul.mubr.msk.f32.vlgmr.msra.gmra.mrb[8].mxu1 %vm287_vm2, %v9704_v56 }
  0xb4   : > { %9713 = vmatmul.mubr.msk.f32.vlgmr.msra.gmra.mrb[2].mxu0 %vm287_vm2, %v9704_v56  ;;  %v1593_v8 = vpop.permute.xlu1 %1592  ;;  %v1591_v9 = vpop.permute.xlu0 %1590  ;;  %1757 = vmatprep.mubr.f32.mxu1 %v10400_v0 }
  0xb5   : > { %4329 = vrot.lane.b32.xlu1 %v10483_v1, %s10413_s24  ;;  %9718 = vmatpush1.msk.msra.mxu0 %vm291_vm1, %v1599_v7  ;;  %v1601_v10 = vsel %vm1598_vm6, %v1589_v62, %v1591_v9  ;;  %v1602_v11 = vsel %vm1598_vm6, %v1591_v9, %v1593_v8  ;;  %v9764_v9 = vld [vmem:[%s11596_s1 + $0x40] sm:$0xff] }
  0xb6   : > { %4327 = vrot.lane.b32.xlu0 %v10505_v6, %s10413_s24  ;;  %9720 = vmatprep.subr.msk.mxu1 %vm291_vm1, %v1602_v11 }
  0xb7   : > { %9721 = vmatpush1.msk.msra.mxu1 %vm291_vm1, %v1601_v10  ;;  %1686 = vmatprep.mubr.f32.mxu0 %v10400_v0 }
  0xb8   : > { %v1597_v13 = vpop.permute.xlu1 %1596  ;;  %v1595_v14 = vpop.permute.xlu0 %1594  ;;  %9719 = vmatmul.mubr.msk.f32.vlgmr.msra.gmra.mrb[0].mxu0 %vm287_vm2, %v9716_v12  ;;  %10068 = vmatprep.subr.mxu1 %v10400_v0 }
  0xb9   : > { %4331 = vrot.lane.b32.xlu1 %v10492_v3, %s10413_s24  ;;  %v1603_v15 = vsel %vm1598_vm6, %v1593_v8, %v1595_v14  ;;  %v1604_v16 = vsel %vm1598_vm6, %v1595_v14, %v1597_v13  ;;  %9722 = vmatmul.mubr.msk.f32.vlgmr.msra.gmra.mrb[0].mxu1 %vm287_vm2, %v9716_v12  ;;  %vm6066_vm6 = vcmask 48128  }
  0xba   : > { %4325 = vrot.lane.b32.xlu0 %v10486_v2, %s10413_s24  ;;  %9723 = vmatprep.subr.msk.mxu0 %vm291_vm1, %v1604_v16 }
  0xbb   : > { %9724 = vmatpush1.msk.msra.mxu0 %vm291_vm1, %v1603_v15  ;;  %10069 = vmatpush3.msk.msra.mxu1 %vm291_vm1, %v1597_v13 }
  0xbc   : > { %v1930_v18 = vpop.permute.xlu1 %1929  ;;  %v1928_v19 = vpop.permute.xlu0 %1927  ;;  %1828 = vmatprep.mubr.f32.mxu0 %v10400_v0  ;;  %10070 = vmatprep.mubr.msk.f32.mxu1 %vm10410_vm3, %v10400_v0 }
  0xbd   : > { %4335 = vrot.lane.b32.xlu1 %v10501_v5, %s10413_s24  ;;  %v1941_v20 = vsel %vm1939_vm7, %v1928_v19, %v1930_v18  ;;  %9725 = vmatmul.mubr.msk.f32.vlgmr.msra.gmra.mrb[2].mxu0 %vm287_vm2, %v9716_v12 }
  0xbe   : > { %4333 = vrot.lane.b32.xlu0 %v10495_v4, %s10413_s24  ;;  %9729 = vmatprep.subr.msk.mxu0 %vm291_vm1, %v1941_v20  ;;  %v5693_v20 = vld [vmem:[%s10480_s26 + $0x10] sm:$0xff] }
  0xbf   : > { %10071 = vmatmul.mubr.msk.f32.vlgmr.msra.gmra.mrb[10].mxu1 %vm287_vm2, %v9716_v12  ;;  %2027 = vmatprep.mubr.f32.mxu0 %v10400_v0 }
  0xc0   : > { %v1932_v21 = vpop.permute.xlu1 %1931  ;;  %v1926_v22 = vpop.permute.xlu0 %1925  ;;  %2098 = vmatprep.mubr.f32.mxu1 %v10400_v0 }
  0xc1   : > { %4339 = vrot.lane.b32.xlu1 %v10583_v23, %s10413_s24  ;;  %v1940_v24 = vsel %vm1939_vm7, %v1926_v22, %v1928_v19  ;;  %v1942_v29 = vsel %vm1939_vm7, %v1930_v18, %v1932_v21 }
  0xc2   : > { %4337 = vrot.lane.b32.xlu0 %v10571_v17, %s10413_s24  ;;  %9730 = vmatpush1.msk.msra.mxu0 %vm291_vm1, %v1940_v24  ;;  %v9776_v24 = vld [vmem:[%s11596_s1 + $0x48] sm:$0xff]  ;;  %s10427_s24 = smov 34  }
  0xc3   : > { %9731 = vmatmul.mubr.msk.f32.vlgmr.msra.gmra.mrb[0].mxu0 %vm287_vm2, %v9728_v25 }
  0xc4   : > { %v1936_v26 = vpop.permute.xlu1 %1935  ;;  %v1934_v27 = vpop.permute.xlu0 %1933  ;;  %2169 = vmatprep.mubr.f32.mxu0 %v10400_v0 }
  0xc5   : > { %4674 = vrot.lane.b32.xlu1 %v10483_v1, %s10414_s30  ;;  %v1943_v28 = vsel %vm1939_vm7, %v1932_v21, %v1934_v27  ;;  %v1944_v33 = vsel %vm1939_vm7, %v1934_v27, %v1936_v26 }
  0xc6   : > { %4672 = vrot.lane.b32.xlu0 %v10505_v6, %s10414_s30  ;;  %9732 = vmatprep.subr.msk.mxu1 %vm291_vm1, %v1943_v28 }
  0xc7   : > { %9733 = vmatpush1.msk.msra.mxu1 %vm291_vm1, %v1942_v29 }
  0xc8   : > { %v2269_v30 = vpop.permute.xlu1 %2268  ;;  %10073 = vmatprep.subr.mxu1 %v10400_v0  ;;  %v1938_v31 = vpop.permute.xlu0 %1937  ;;  %9734 = vmatmul.mubr.msk.f32.vlgmr.msra.gmra.mrb[0].mxu1 %vm287_vm2, %v9728_v25 }
  0xc9   : > { %4676 = vrot.lane.b32.xlu1 %v10492_v3, %s10414_s30  ;;  %10074 = vmatpush3.msk.msra.mxu1 %vm291_vm1, %v1938_v31  ;;  %v1945_v32 = vsel %vm1939_vm7, %v1936_v26, %v1938_v31  ;;  %v6037_v31 = vld [vmem:[%s10480_s26 + $0x8] sm:$0xff]  ;;  %vm6408_vm7 = vcmask 457728  }
  0xca   : > { %4670 = vrot.lane.b32.xlu0 %v10486_v2, %s10414_s30  ;;  %9735 = vmatprep.subr.msk.mxu0 %vm291_vm1, %v1945_v32 }
  0xcb   : > { %9736 = vmatpush1.msk.msra.mxu0 %vm291_vm1, %v1944_v33  ;;  %10075 = vmatprep.mubr.msk.f32.mxu1 %vm10410_vm3, %v10400_v0 }
  0xcc   : > { %v2267_v34 = vpop.permute.xlu1 %2266  ;;  %v2271_v35 = vpop.permute.xlu0 %2270  ;;  %9737 = vmatmul.mubr.msk.f32.vlgmr.msra.gmra.mrb[2].mxu0 %vm287_vm2, %v9728_v25  ;;  %10076 = vmatmul.mubr.msk.f32.vlgmr.msra.gmra.mrb[12].mxu1 %vm287_vm2, %v9728_v25  ;;  %v5703_v25 = vcombine.high %v5693_v20, %v5693_v20 }
  0xcd   : > { %4680 = vrot.lane.b32.xlu1 %v10501_v5, %s10414_s30  ;;  %v2281_v36 = vsel %vm2280_vm8, %v2267_v34, %v2269_v30  ;;  %v2282_v37 = vsel %vm2280_vm8, %v2269_v30, %v2271_v35  ;;  %2368 = vmatprep.mubr.f32.mxu0 %v10400_v0 }
  0xce   : > { %4678 = vrot.lane.b32.xlu0 %v10495_v4, %s10414_s30  ;;  %9741 = vmatprep.subr.msk.mxu0 %vm291_vm1, %v2282_v37 }
  0xcf   : > { %9742 = vmatpush1.msk.msra.mxu0 %vm291_vm1, %v2281_v36  ;;  %2439 = vmatprep.mubr.f32.mxu1 %v10400_v0  ;;  %v6047_v36 = vcombine.high %v6037_v31, %v6037_v31 }
  0xd0   : > { %v2275_v39 = vpop.permute.xlu1 %2274  ;;  %v2273_v40 = vpop.permute.xlu0 %2272  ;;  %9743 = vmatmul.mubr.msk.f32.vlgmr.msra.gmra.mrb[0].mxu0 %vm287_vm2, %v9740_v38 }
  0xd1   : > { %4684 = vrot.lane.b32.xlu1 %v10583_v23, %s10414_s30  ;;  %v2283_v41 = vsel %vm2280_vm8, %v2271_v35, %v2273_v40  ;;  %v2284_v42 = vsel %vm2280_vm8, %v2273_v40, %v2275_v39  ;;  %2510 = vmatprep.mubr.f32.mxu0 %v10400_v0 }
  0xd2   : > { %4682 = vrot.lane.b32.xlu0 %v10571_v17, %s10414_s30  ;;  %9744 = vmatprep.subr.msk.mxu1 %vm291_vm1, %v2284_v42  ;;  %s10421_s30 = smov 54  }
  0xd3   : > { %9745 = vmatpush1.msk.msra.mxu1 %vm291_vm1, %v2283_v41  ;;  %v9788_v41 = vld [vmem:[%s11596_s1 + $0x50] sm:$0xff] }
  0xd4   : > { %v2279_v43 = vpop.permute.xlu1 %2278  ;;  %v2277_v44 = vpop.permute.xlu0 %2276  ;;  %10078 = vmatprep.subr.mxu1 %v10400_v0  ;;  %9746 = vmatmul.mubr.msk.f32.vlgmr.msra.gmra.mrb[0].mxu1 %vm287_vm2, %v9740_v38 }
  0xd5   : > { %5019 = vrot.lane.b32.xlu1 %v10483_v1, %s10415_s9  ;;  %v2285_v45 = vsel %vm2280_vm8, %v2275_v39, %v2277_v44  ;;  %v2286_v46 = vsel %vm2280_vm8, %v2277_v44, %v2279_v43  ;;  %10079 = vmatpush3.msk.msra.mxu1 %vm291_vm1, %v2279_v43  ;;  %vm6749_vm8 = vcmask 449536  }
  0xd6   : > { %5017 = vrot.lane.b32.xlu0 %v10505_v6, %s10415_s9  ;;  %9747 = vmatprep.subr.msk.mxu0 %vm291_vm1, %v2286_v46 }
  0xd7   : > { %9748 = vmatpush1.msk.msra.mxu0 %vm291_vm1, %v2285_v45  ;;  %10080 = vmatprep.mubr.msk.f32.mxu1 %vm10410_vm3, %v10400_v0  ;;  %v10970_v45 = vld [vmem:[%s10480_s26 + $0x4] sm:$0xff] }
  0xd8   : > { %v2612_v47 = vpop.permute.xlu1 %2611  ;;  %v2610_v48 = vpop.permute.xlu0 %2609  ;;  %9749 = vmatmul.mubr.msk.f32.vlgmr.msra.gmra.mrb[2].mxu0 %vm287_vm2, %v9740_v38  ;;  %10081 = vmatmul.mubr.msk.f32.vlgmr.msra.gmra.mrb[14].mxu1 %vm287_vm2, %v9740_v38 }
  0xd9   : > { %5021 = vrot.lane.b32.xlu1 %v10492_v3, %s10415_s9  ;;  %v2623_v49 = vsel %vm2621_vm9, %v2610_v48, %v2612_v47  ;;  %2780 = vmatprep.mubr.f32.mxu1 %v10400_v0 }
  0xda   : > { %5015 = vrot.lane.b32.xlu0 %v10486_v2, %s10415_s9  ;;  %9753 = vmatprep.subr.msk.mxu0 %vm291_vm1, %v2623_v49  ;;  %v10983_v49 = vcombine.high %v10970_v45, %v10970_v45 }
  0xdb   : > { %2709 = vmatprep.mubr.f32.mxu0 %v10400_v0 }
  0xdc   : > { %v2614_v50 = vpop.permute.xlu1 %2613  ;;  %v2608_v51 = vpop.permute.xlu0 %2607 }
  0xdd   : > { %5025 = vrot.lane.b32.xlu1 %v10501_v5, %s10415_s9  ;;  %v2622_v52 = vsel %vm2621_vm9, %v2608_v51, %v2610_v48  ;;  %v2624_v57 = vsel %vm2621_vm9, %v2612_v47, %v2614_v50  ;;  %v10979_v48 = vld [vmem:[%s10480_s26 + $0xc] sm:$0xff] }
  0xde   : > { %5023 = vrot.lane.b32.xlu0 %v10495_v4, %s10415_s9  ;;  %9754 = vmatpush1.msk.msra.mxu0 %vm291_vm1, %v2622_v52 }
  0xdf   : > { %9755 = vmatmul.mubr.msk.f32.vlgmr.msra.gmra.mrb[0].mxu0 %vm287_vm2, %v9752_v53 }
  0xe0   : > { %v2618_v54 = vpop.permute.xlu1 %2617  ;;  %v2616_v55 = vpop.permute.xlu0 %2615  ;;  %2851 = vmatprep.mubr.f32.mxu0 %v10400_v0 }
  0xe1   : > { %5029 = vrot.lane.b32.xlu1 %v10583_v23, %s10415_s9  ;;  %v2625_v56 = vsel %vm2621_vm9, %v2614_v50, %v2616_v55  ;;  %v2626_v61 = vsel %vm2621_vm9, %v2616_v55, %v2618_v54 }
  0xe2   : > { %5027 = vrot.lane.b32.xlu0 %v10571_v17, %s10415_s9  ;;  %9756 = vmatprep.subr.msk.mxu1 %vm291_vm1, %v2625_v56  ;;  %s10422_s9 = smov 46  }
  0xe3   : > { %9757 = vmatpush1.msk.msra.mxu1 %vm291_vm1, %v2624_v57 }
  0xe4   : > { %v2951_v58 = vpop.permute.xlu1 %2950  ;;  %10083 = vmatprep.subr.mxu1 %v10400_v0  ;;  %v2620_v59 = vpop.permute.xlu0 %2619  ;;  %9758 = vmatmul.mubr.msk.f32.vlgmr.msra.gmra.mrb[0].mxu1 %vm287_vm2, %v9752_v53 }
  0xe5   : > { %5364 = vrot.lane.b32.xlu1 %v10483_v1, %s10416_s12  ;;  %10084 = vmatpush3.msk.msra.mxu1 %vm291_vm1, %v2620_v59  ;;  %v2627_v60 = vsel %vm2621_vm9, %v2618_v54, %v2620_v59  ;;  %v11003_v54 = vld [vmem:[%s10480_s26 + $0x14] sm:$0xff]  ;;  %vm7090_vm9 = vcmask 441344  }
  0xe6   : > { %5362 = vrot.lane.b32.xlu0 %v10505_v6, %s10416_s12  ;;  %9759 = vmatprep.subr.msk.mxu0 %vm291_vm1, %v2627_v60 }
  0xe7   : > { %9760 = vmatpush1.msk.msra.mxu0 %vm291_vm1, %v2626_v61  ;;  %10085 = vmatprep.mubr.msk.f32.mxu1 %vm10410_vm3, %v10400_v0  ;;  %v9800_v61 = vld [vmem:[%s11596_s1 + $0x58] sm:$0xff] }
  0xe8   : > { %v2949_v62 = vpop.permute.xlu1 %2948  ;;  %v2953_v63 = vpop.permute.xlu0 %2952  ;;  %9761 = vmatmul.mubr.msk.f32.vlgmr.msra.gmra.mrb[2].mxu0 %vm287_vm2, %v9752_v53  ;;  %10086 = vmatmul.mubr.msk.f32.vlgmr.msra.gmra.mrb[16].mxu1 %vm287_vm2, %v9752_v53 }
  0xe9   : > { %5366 = vrot.lane.b32.xlu1 %v10492_v3, %s10416_s12  ;;  %v2963_v7 = vsel %vm2962_vm10, %v2949_v62, %v2951_v58  ;;  %v2964_v8 = vsel %vm2962_vm10, %v2951_v58, %v2953_v63  ;;  %3050 = vmatprep.mubr.f32.mxu0 %v10400_v0  ;;  %v11014_v58 = vcombine.high %v11003_v54, %v11003_v54 }
  0xea   : > { %5360 = vrot.lane.b32.xlu0 %v10486_v2, %s10416_s12  ;;  %9765 = vmatprep.subr.msk.mxu0 %vm291_vm1, %v2964_v8 }
  0xeb   : > { %9766 = vmatpush1.msk.msra.mxu0 %vm291_vm1, %v2963_v7  ;;  %3121 = vmatprep.mubr.f32.mxu1 %v10400_v0  ;;  %v6384_v7 = vld [vmem:[%s10480_s26 + $0x1c] sm:$0xf] }
  0xec   : > { %v2957_v10 = vpop.permute.xlu1 %2956  ;;  %v2955_v11 = vpop.permute.xlu0 %2954  ;;  %9767 = vmatmul.mubr.msk.f32.vlgmr.msra.gmra.mrb[0].mxu0 %vm287_vm2, %v9764_v9 }
  0xed   : > { %5370 = vrot.lane.b32.xlu1 %v10501_v5, %s10416_s12  ;;  %v2965_v12 = vsel %vm2962_vm10, %v2953_v63, %v2955_v11  ;;  %v2966_v13 = vsel %vm2962_vm10, %v2955_v11, %v2957_v10  ;;  %3192 = vmatprep.mubr.f32.mxu0 %v10400_v0 }
  0xee   : > { %5368 = vrot.lane.b32.xlu0 %v10495_v4, %s10416_s12  ;;  %9768 = vmatprep.subr.msk.mxu1 %vm291_vm1, %v2966_v13 }
  0xef   : > { %9769 = vmatpush1.msk.msra.mxu1 %vm291_vm1, %v2965_v12 }
  0xf0   : > { %v2961_v14 = vpop.permute.xlu1 %2960  ;;  %v2959_v15 = vpop.permute.xlu0 %2958  ;;  %10088 = vmatprep.subr.mxu1 %v10400_v0  ;;  %9770 = vmatmul.mubr.msk.f32.vlgmr.msra.gmra.mrb[0].mxu1 %vm287_vm2, %v9764_v9 }
  0xf1   : > { %5374 = vrot.lane.b32.xlu1 %v10583_v23, %s10416_s12  ;;  %v2967_v5 = vsel %vm2962_vm10, %v2957_v10, %v2959_v15  ;;  %v2968_v16 = vsel %vm2962_vm10, %v2959_v15, %v2961_v14  ;;  %10089 = vmatpush3.msk.msra.mxu1 %vm291_vm1, %v2961_v14  ;;  %vm7431_vm10 = vcmask 375808  }
  0xf2   : > { %5372 = vrot.lane.b32.xlu0 %v10571_v17, %s10416_s12  ;;  %9771 = vmatprep.subr.msk.mxu0 %vm291_vm1, %v2968_v16 }
  0xf3   : > { %9772 = vmatpush1.msk.msra.mxu0 %vm291_vm1, %v2967_v5  ;;  %10090 = vmatprep.mubr.msk.f32.mxu1 %vm10410_vm3, %v10400_v0 }
  0xf4   : > { %v3295_v4 = vpop.permute.xlu1 %3294  ;;  %v3293_v18 = vpop.permute.xlu0 %3292  ;;  %9773 = vmatmul.mubr.msk.f32.vlgmr.msra.gmra.mrb[2].mxu0 %vm287_vm2, %v9764_v9  ;;  %10091 = vmatmul.mubr.msk.f32.vlgmr.msra.gmra.mrb[18].mxu1 %vm287_vm2, %v9764_v9 }
  0xf5   : > { %5709 = vrot.lane.b32.xlu1 %v10483_v1, %s10417_s15  ;;  %v3308_v19 = vsel %vm3306_vm11, %v3293_v18, %v3295_v4  ;;  %3466 = vmatprep.mubr.f32.mxu1 %v10400_v0 }
  0xf6   : > { %5707 = vrot.lane.b32.xlu0 %v10505_v6, %s10417_s15  ;;  %9777 = vmatprep.subr.msk.mxu0 %vm291_vm1, %v3308_v19 }
  0xf7   : > { %3395 = vmatprep.mubr.f32.mxu0 %v10400_v0 }
  0xf8   : > { %v3297_v21 = vpop.permute.xlu1 %3296  ;;  %v3291_v22 = vpop.permute.xlu0 %3290 }
  0xf9   : > { %5711 = vrot.lane.b32.xlu1 %v10492_v3, %s10417_s15  ;;  %v3307_v1 = vsel %vm3306_vm11, %v3291_v22, %v3293_v18  ;;  %v3309_v27 = vsel %vm3306_vm11, %v3295_v4, %v3297_v21  ;;  %v6725_v18 = vld [vmem:[%s10480_s26 + $0x1c] sm:$0xf] }
  0xfa   : > { %5705 = vrot.lane.b32.xlu0 %v10486_v2, %s10417_s15  ;;  %9778 = vmatpush1.msk.msra.mxu0 %vm291_vm1, %v3307_v1  ;;  %v6036_v2 = vld [vmem:[%s10480_s26] sm:$0xff] }
  0xfb   : > { %9779 = vmatmul.mubr.msk.f32.vlgmr.msra.gmra.mrb[0].mxu0 %vm287_vm2, %v9776_v24  ;;  %v6046_v32 = vcombine.high %v6036_v2, %v6036_v2 }
  0xfc   : > { %v3301_v6 = vpop.permute.xlu1 %3300  ;;  %3537 = vmatprep.mubr.f32.mxu0 %v10400_v0 }
  0xfd   : > { %5715 = vrot.lane.b32.xlu1 %v5703_v25, %s10417_s15  ;;  %v3299_v26 = vpop.permute.xlu0 %3298 }
  0xfe   : > { %5713 = vrot.lane.b32.xlu0 %v5693_v20, %s10417_s15  ;;  %v3310_v3 = vsel %vm3306_vm11, %v3297_v21, %v3299_v26  ;;  %v3311_v34 = vsel %vm3306_vm11, %v3299_v26, %v3301_v6  ;;  %v9812_v21 = vld [vmem:[%s11596_s1 + $0x60] sm:$0xff] }
  0xff   : > { %9780 = vmatprep.subr.msk.mxu1 %vm291_vm1, %v3310_v3 }
 0x100   : > { %9781 = vmatpush1.msk.msra.mxu1 %vm291_vm1, %v3309_v27  ;;  %v3305_v28 = vpop.permute.xlu1 %3304 }
 0x101   : > { %5719 = vrot.lane.b32.xlu1 %v10583_v23, %s10417_s15  ;;  %v3303_v29 = vpop.permute.xlu0 %3302  ;;  %10093 = vmatprep.subr.mxu1 %v10400_v0 }
 0x102   : > { %5717 = vrot.lane.b32.xlu0 %v10571_v17, %s10417_s15  ;;  %v3313_v30 = vsel %vm3306_vm11, %v3303_v29, %v3305_v28  ;;  %9782 = vmatmul.mubr.msk.f32.vlgmr.msra.gmra.mrb[0].mxu1 %vm287_vm2, %v9776_v24  ;;  %v3312_v33 = vsel %vm3306_vm11, %v3301_v6, %v3303_v29  ;;  %vm7772_vm11 = vcmask 367616  }
 0x103   : > { %9783 = vmatprep.subr.msk.mxu0 %vm291_vm1, %v3312_v33  ;;  %10094 = vmatpush3.msk.msra.mxu1 %vm291_vm1, %v3313_v30  ;;  %v7066_v33 = vld [vmem:[%s10480_s26 + $0x1c] sm:$0xf] }
 0x104   : > { %9784 = vmatpush1.msk.msra.mxu0 %vm291_vm1, %v3311_v34  ;;  %v3640_v35 = vpop.permute.xlu1 %3639  ;;  %10095 = vmatprep.mubr.msk.f32.mxu1 %vm10410_vm3, %v10400_v0 }
 0x105   : > { %6054 = vrot.lane.b32.xlu1 %v6037_v31, %s10418_s18  ;;  %v3638_v37 = vpop.permute.xlu0 %3637  ;;  %9785 = vmatmul.mubr.msk.f32.vlgmr.msra.gmra.mrb[2].mxu0 %vm287_vm2, %v9776_v24 }
 0x106   : > { %6052 = vrot.lane.b32.xlu0 %v6046_v32, %s10418_s18  ;;  %v3653_v38 = vsel %vm3651_vm12, %v3638_v37, %v3640_v35  ;;  %10096 = vmatmul.mubr.msk.f32.vlgmr.msra.gmra.mrb[20].mxu1 %vm287_vm2, %v9776_v24 }
 0x107   : > { %9789 = vmatprep.subr.msk.mxu0 %vm291_vm1, %v3653_v38  ;;  %3811 = vmatprep.mubr.f32.mxu1 %v10400_v0 }
 0x108   : > { %v3642_v39 = vpop.permute.xlu1 %3641  ;;  %3740 = vmatprep.mubr.f32.mxu0 %v10400_v0 }
 0x109   : > { %6056 = vrot.lane.b32.xlu1 %v6047_v36, %s10418_s18  ;;  %v3636_v40 = vpop.permute.xlu0 %3635  ;;  %v3654_v47 = vsel %vm3651_vm12, %v3640_v35, %v3642_v39  ;;  %v9824_v35 = vld [vmem:[%s11596_s1 + $0x68] sm:$0xff] }
 0x10a   : > { %6050 = vrot.lane.b32.xlu0 %v6036_v2, %s10418_s18  ;;  %v3652_v42 = vsel %vm3651_vm12, %v3636_v40, %v3638_v37 }
 0x10b   : > { %9790 = vmatpush1.msk.msra.mxu0 %vm291_vm1, %v3652_v42 }
 0x10c   : > { %9791 = vmatmul.mubr.msk.f32.vlgmr.msra.gmra.mrb[0].mxu0 %vm287_vm2, %v9788_v41 }
 0x10d   : > { %6060 = vrot.lane.b32.xlu1 %v5703_v25, %s10418_s18  ;;  %3882 = vmatprep.mubr.f32.mxu0 %v10400_v0 }
 0x10e   : > { %6058 = vrot.lane.b32.xlu0 %v5693_v20, %s10418_s18  ;;  %v3646_v43 = vpop.permute.xlu1 %3645 }
 0x10f   : > { %v3644_v44 = vpop.permute.xlu0 %3643 }
 0x110   : > { %v3655_v46 = vsel %vm3651_vm12, %v3642_v39, %v3644_v44  ;;  %v3656_v53 = vsel %vm3651_vm12, %v3644_v44, %v3646_v43 }
 0x111   : > { %6064 = vrot.lane.b32.xlu1 %v10583_v23, %s10418_s18  ;;  %9792 = vmatprep.subr.msk.mxu1 %vm291_vm1, %v3655_v46 }
 0x112   : > { %6062 = vrot.lane.b32.xlu0 %v10571_v17, %s10418_s18  ;;  %9793 = vmatpush1.msk.msra.mxu1 %vm291_vm1, %v3654_v47  ;;  %v10993_v17 = vcombine.high %v10979_v48, %v10979_v48  ;;  %v7407_v47 = vld [vmem:[%s10480_s26 + $0x1c] sm:$0xf] }
 0x113   : > { %v3650_v50 = vpop.permute.xlu1 %3649  ;;  %v3648_v51 = vpop.permute.xlu0 %3647  ;;  %10098 = vmatprep.subr.mxu1 %v10400_v0  ;;  %9794 = vmatmul.mubr.msk.f32.vlgmr.msra.gmra.mrb[0].mxu1 %vm287_vm2, %v9788_v41 }
 0x114   : > { %v3658_v23 = vsel %vm3651_vm12, %v3648_v51, %v3650_v50  ;;  %v3657_v52 = vsel %vm3651_vm12, %v3646_v43, %v3648_v51  ;;  %10100 = vmatprep.mubr.msk.f32.mxu1 %vm10410_vm3, %v10400_v0  ;;  %vm8113_vm12 = vcmask 359424  }
 0x115   : > { %6398 = vrot.lane.b32.xlu1 %v10979_v48, %s10419_s23  ;;  %9795 = vmatprep.subr.msk.mxu0 %vm291_vm1, %v3657_v52 }
 0x116   : > { %6396 = vrot.lane.b32.xlu0 %v10983_v49, %s10419_s23  ;;  %10099 = vmatpush3.msk.msra.mxu1 %vm291_vm1, %v3658_v23 }
 0x117   : > { %9796 = vmatpush1.msk.msra.mxu0 %vm291_vm1, %v3656_v53  ;;  %v3985_v55 = vpop.permute.xlu1 %3984  ;;  %10101 = vmatmul.mubr.msk.f32.vlgmr.msra.gmra.mrb[22].mxu1 %vm287_vm2, %v9788_v41 }
 0x118   : > { %v3983_v56 = vpop.permute.xlu0 %3982  ;;  %9797 = vmatmul.mubr.msk.f32.vlgmr.msra.gmra.mrb[2].mxu0 %vm287_vm2, %v9788_v41  ;;  %4156 = vmatprep.mubr.f32.mxu1 %v10400_v0 }
 0x119   : > { %6400 = vrot.lane.b32.xlu1 %v10993_v17, %s10419_s23  ;;  %v3998_v57 = vsel %vm3996_vm13, %v3983_v56, %v3985_v55  ;;  %4085 = vmatprep.mubr.f32.mxu0 %v10400_v0 }
 0x11a   : > { %6394 = vrot.lane.b32.xlu0 %v10970_v45, %s10419_s23  ;;  %9801 = vmatprep.subr.msk.mxu0 %vm291_vm1, %v3998_v57 }
 0x11b   : > { %v3987_v59 = vpop.permute.xlu1 %3986 }
 0x11c   : > { %v3981_v60 = vpop.permute.xlu0 %3980  ;;  %v3999_v10 = vsel %vm3996_vm13, %v3985_v55, %v3987_v59 }
 0x11d   : > { %v3997_v62 = vsel %vm3996_vm13, %v3981_v60, %v3983_v56  ;;  %6404 = vrot.lane.b32.xlu1 %v11014_v58, %s10419_s23  ;;  %v9836_v56 = vld [vmem:[%s11596_s1 + $0x70] sm:$0xff] }
 0x11e   : > { %6402 = vrot.lane.b32.xlu0 %v11003_v54, %s10419_s23  ;;  %9802 = vmatpush1.msk.msra.mxu0 %vm291_vm1, %v3997_v62 }
 0x11f   : > { %v3991_v63 = vpop.permute.xlu1 %3990  ;;  %9803 = vmatmul.mubr.msk.f32.vlgmr.msra.gmra.mrb[0].mxu0 %vm287_vm2, %v9800_v61 }
 0x120   : > { %v3989_v8 = vpop.permute.xlu0 %3988  ;;  %4227 = vmatprep.mubr.f32.mxu0 %v10400_v0 }
 0x121   : > { %6737 = vrot.lane.b32.xlu1 %v10983_v49, %s10420_s27  ;;  %v4000_v9 = vsel %vm3996_vm13, %v3987_v59, %v3989_v8  ;;  %v4001_v15 = vsel %vm3996_vm13, %v3989_v8, %v3991_v63 }
 0x122   : > { %6406 = vrot.lane.b32.xlu0 %v6384_v7, %s10419_s23  ;;  %9804 = vmatprep.subr.msk.mxu1 %vm291_vm1, %v4000_v9 }
 0x123   : > { %9805 = vmatpush1.msk.msra.mxu1 %vm291_vm1, %v3999_v10  ;;  %v3995_v11 = vpop.permute.xlu1 %3994 }
 0x124   : > { %v3993_v12 = vpop.permute.xlu0 %3992  ;;  %10103 = vmatprep.subr.mxu1 %v10400_v0  ;;  %9806 = vmatmul.mubr.msk.f32.vlgmr.msra.gmra.mrb[0].mxu1 %vm287_vm2, %v9800_v61 }
 0x125   : > { %v4003_v13 = vsel %vm3996_vm13, %v3993_v12, %v3995_v11  ;;  %6735 = vrot.lane.b32.xlu1 %v10970_v45, %s10420_s27  ;;  %v4002_v14 = vsel %vm3996_vm13, %v3991_v63, %v3993_v12  ;;  %10105 = vmatprep.mubr.msk.f32.mxu1 %vm10410_vm3, %v10400_v0  ;;  %v7748_v11 = vld [vmem:[%s10480_s26 + $0x1c] sm:$0xf]  ;;  %vm8454_vm13 = vcmask 293888  }
 0x126   : > { %6739 = vrot.lane.b32.xlu0 %v10979_v48, %s10420_s27  ;;  %9807 = vmatprep.subr.msk.mxu0 %vm291_vm1, %v4002_v14 }
 0x127   : > { %10104 = vmatpush3.msk.msra.mxu1 %vm291_vm1, %v4003_v13  ;;  %9808 = vmatpush1.msk.msra.mxu0 %vm291_vm1, %v4001_v15  ;;  %v4330_v5 = vpop.permute.xlu1 %4329 }
 0x128   : > { %v4328_v16 = vpop.permute.xlu0 %4327  ;;  %9809 = vmatmul.mubr.msk.f32.vlgmr.msra.gmra.mrb[2].mxu0 %vm287_vm2, %v9800_v61  ;;  %10106 = vmatmul.mubr.msk.f32.vlgmr.msra.gmra.mrb[24].mxu1 %vm287_vm2, %v9800_v61 }
 0x129   : > { %6743 = vrot.lane.b32.xlu1 %v11003_v54, %s10420_s27  ;;  %v4343_v4 = vsel %vm4341_vm14, %v4328_v16, %v4330_v5  ;;  %4501 = vmatprep.mubr.f32.mxu1 %v10400_v0 }
 0x12a   : > { %6741 = vrot.lane.b32.xlu0 %v10993_v17, %s10420_s27  ;;  %9813 = vmatprep.subr.msk.mxu0 %vm291_vm1, %v4343_v4 }
 0x12b   : > { %v4332_v19 = vpop.permute.xlu1 %4331  ;;  %4430 = vmatprep.mubr.f32.mxu0 %v10400_v0 }
 0x12c   : > { %v4326_v20 = vpop.permute.xlu0 %4325  ;;  %v4344_v6 = vsel %vm4341_vm14, %v4330_v5, %v4332_v19 }
 0x12d   : > { %v4342_v22 = vsel %vm4341_vm14, %v4326_v20, %v4328_v16  ;;  %6747 = vrot.lane.b32.xlu1 %v6725_v18, %s10420_s27  ;;  %v9848_v16 = vld [vmem:[%s11596_s1 + $0x78] sm:$0xff] }
 0x12e   : > { %6745 = vrot.lane.b32.xlu0 %v11014_v58, %s10420_s27  ;;  %9814 = vmatpush1.msk.msra.mxu0 %vm291_vm1, %v4342_v22 }
 0x12f   : > { %v4336_v24 = vpop.permute.xlu1 %4335  ;;  %9815 = vmatmul.mubr.msk.f32.vlgmr.msra.gmra.mrb[0].mxu0 %vm287_vm2, %v9812_v21 }
 0x130   : > { %v4334_v1 = vpop.permute.xlu0 %4333  ;;  %4572 = vmatprep.mubr.f32.mxu0 %v10400_v0 }
 0x131   : > { %7080 = vrot.lane.b32.xlu1 %v10979_v48, %s10421_s30  ;;  %v4345_v25 = vsel %vm4341_vm14, %v4332_v19, %v4334_v1  ;;  %v4346_v28 = vsel %vm4341_vm14, %v4334_v1, %v4336_v24 }
 0x132   : > { %7078 = vrot.lane.b32.xlu0 %v10983_v49, %s10421_s30  ;;  %9816 = vmatprep.subr.msk.mxu1 %vm291_vm1, %v4345_v25 }
 0x133   : > { %9817 = vmatpush1.msk.msra.mxu1 %vm291_vm1, %v4344_v6  ;;  %v4340_v26 = vpop.permute.xlu1 %4339 }
 0x134   : > { %v4338_v3 = vpop.permute.xlu0 %4337  ;;  %10108 = vmatprep.subr.mxu1 %v10400_v0  ;;  %9818 = vmatmul.mubr.msk.f32.vlgmr.msra.gmra.mrb[0].mxu1 %vm287_vm2, %v9812_v21 }
 0x135   : > { %v4348_v27 = vsel %vm4341_vm14, %v4338_v3, %v4340_v26  ;;  %7082 = vrot.lane.b32.xlu1 %v10993_v17, %s10421_s30  ;;  %v4347_v2 = vsel %vm4341_vm14, %v4336_v24, %v4338_v3  ;;  %10110 = vmatprep.mubr.msk.f32.mxu1 %vm10410_vm3, %v10400_v0  ;;  %vm8795_vm14 = vcmask 285696  }
 0x136   : > { %7076 = vrot.lane.b32.xlu0 %v10970_v45, %s10421_s30  ;;  %9819 = vmatprep.subr.msk.mxu0 %vm291_vm1, %v4347_v2 }
 0x137   : > { %10109 = vmatpush3.msk.msra.mxu1 %vm291_vm1, %v4348_v27  ;;  %9820 = vmatpush1.msk.msra.mxu0 %vm291_vm1, %v4346_v28  ;;  %v4675_v29 = vpop.permute.xlu1 %4674 }
 0x138   : > { %v4673_v30 = vpop.permute.xlu0 %4672  ;;  %9821 = vmatmul.mubr.msk.f32.vlgmr.msra.gmra.mrb[2].mxu0 %vm287_vm2, %v9812_v21  ;;  %10111 = vmatmul.mubr.msk.f32.vlgmr.msra.gmra.mrb[26].mxu1 %vm287_vm2, %v9812_v21  ;;  %v8089_v21 = vld [vmem:[%s10480_s26 + $0x1c] sm:$0xf] }
 0x139   : > { %7086 = vrot.lane.b32.xlu1 %v11014_v58, %s10421_s30  ;;  %v4688_v31 = vsel %vm4686_vm15, %v4673_v30, %v4675_v29  ;;  %4846 = vmatprep.mubr.f32.mxu1 %v10400_v0 }
 0x13a   : > { %7084 = vrot.lane.b32.xlu0 %v11003_v54, %s10421_s30  ;;  %9825 = vmatprep.subr.msk.mxu0 %vm291_vm1, %v4688_v31 }
 0x13b   : > { %v4677_v32 = vpop.permute.xlu1 %4676  ;;  %4775 = vmatprep.mubr.f32.mxu0 %v10400_v0 }
 0x13c   : > { %v4671_v34 = vpop.permute.xlu0 %4670  ;;  %v4689_v40 = vsel %vm4686_vm15, %v4675_v29, %v4677_v32 }
 0x13d   : > { %v4687_v36 = vsel %vm4686_vm15, %v4671_v34, %v4673_v30  ;;  %7419 = vrot.lane.b32.xlu1 %v10983_v49, %s10422_s9  ;;  %v9860_v30 = vld [vmem:[%s11596_s1 + $0x80] sm:$0xff] }
 0x13e   : > { %7088 = vrot.lane.b32.xlu0 %v7066_v33, %s10421_s30  ;;  %9826 = vmatpush1.msk.msra.mxu0 %vm291_vm1, %v4687_v36  ;;  %v8430_v36 = vld [vmem:[%s10480_s26 + $0x1c] sm:$0xf] }
 0x13f   : > { %v4681_v37 = vpop.permute.xlu1 %4680  ;;  %9827 = vmatmul.mubr.msk.f32.vlgmr.msra.gmra.mrb[0].mxu0 %vm287_vm2, %v9824_v35 }
 0x140   : > { %v4679_v38 = vpop.permute.xlu0 %4678  ;;  %4917 = vmatprep.mubr.f32.mxu0 %v10400_v0 }
 0x141   : > { %7417 = vrot.lane.b32.xlu1 %v10970_v45, %s10422_s9  ;;  %v4690_v39 = vsel %vm4686_vm15, %v4677_v32, %v4679_v38  ;;  %v4691_v46 = vsel %vm4686_vm15, %v4679_v38, %v4681_v37 }
 0x142   : > { %7421 = vrot.lane.b32.xlu0 %v10979_v48, %s10422_s9  ;;  %9828 = vmatprep.subr.msk.mxu1 %vm291_vm1, %v4690_v39 }
 0x143   : > { %9829 = vmatpush1.msk.msra.mxu1 %vm291_vm1, %v4689_v40  ;;  %v4685_v41 = vpop.permute.xlu1 %4684 }
 0x144   : > { %v4683_v42 = vpop.permute.xlu0 %4682  ;;  %10113 = vmatprep.subr.mxu1 %v10400_v0  ;;  %9830 = vmatmul.mubr.msk.f32.vlgmr.msra.gmra.mrb[0].mxu1 %vm287_vm2, %v9824_v35 }
 0x145   : > { %v4693_v43 = vsel %vm4686_vm15, %v4683_v42, %v4685_v41  ;;  %7425 = vrot.lane.b32.xlu1 %v11003_v54, %s10422_s9  ;;  %v4692_v44 = vsel %vm4686_vm15, %v4681_v37, %v4683_v42  ;;  %10115 = vmatprep.mubr.msk.f32.mxu1 %vm10410_vm3, %v10400_v0  ;;  %vm9136_vm15 = vcmask 277504  }
 0x146   : > { %7423 = vrot.lane.b32.xlu0 %v10993_v17, %s10422_s9  ;;  %9831 = vmatprep.subr.msk.mxu0 %vm291_vm1, %v4692_v44 }
 0x147   : > { %10114 = vmatpush3.msk.msra.mxu1 %vm291_vm1, %v4693_v43  ;;  %9832 = vmatpush1.msk.msra.mxu0 %vm291_vm1, %v4691_v46  ;;  %v5020_v50 = vpop.permute.xlu1 %5019 }
 0x148   : > { %v5018_v51 = vpop.permute.xlu0 %5017  ;;  %9833 = vmatmul.mubr.msk.f32.vlgmr.msra.gmra.mrb[2].mxu0 %vm287_vm2, %v9824_v35  ;;  %10116 = vmatmul.mubr.msk.f32.vlgmr.msra.gmra.mrb[28].mxu1 %vm287_vm2, %v9824_v35 }
 0x149   : > { %7429 = vrot.lane.b32.xlu1 %v7407_v47, %s10422_s9  ;;  %v5033_v23 = vsel %vm5031_vm0, %v5018_v51, %v5020_v50  ;;  %5191 = vmatprep.mubr.f32.mxu1 %v10400_v0 }
 0x14a   : > { %7427 = vrot.lane.b32.xlu0 %v11014_v58, %s10422_s9  ;;  %9837 = vmatprep.subr.msk.mxu0 %vm291_vm1, %v5033_v23 }
 0x14b   : > { %v5022_v52 = vpop.permute.xlu1 %5021  ;;  %5120 = vmatprep.mubr.f32.mxu0 %v10400_v0 }
 0x14c   : > { %v5016_v53 = vpop.permute.xlu0 %5015  ;;  %v5034_v61 = vsel %vm5031_vm0, %v5020_v50, %v5022_v52  ;;  %v8771_v50 = vld [vmem:[%s10480_s26 + $0x1c] sm:$0xf] }
 0x14d   : > { %v5032_v55 = vsel %vm5031_vm0, %v5016_v53, %v5018_v51  ;;  %7762 = vrot.lane.b32.xlu1 %v10979_v48, %s10423_s10  ;;  %v9872_v51 = vld [vmem:[%s11596_s1 + $0x88] sm:$0xff] }
 0x14e   : > { %7760 = vrot.lane.b32.xlu0 %v10983_v49, %s10423_s10  ;;  %9838 = vmatpush1.msk.msra.mxu0 %vm291_vm1, %v5032_v55 }
 0x14f   : > { %v5026_v57 = vpop.permute.xlu1 %5025  ;;  %9839 = vmatmul.mubr.msk.f32.vlgmr.msra.gmra.mrb[0].mxu0 %vm287_vm2, %v9836_v56 }
 0x150   : > { %v5024_v59 = vpop.permute.xlu0 %5023  ;;  %5262 = vmatprep.mubr.f32.mxu0 %v10400_v0 }
 0x151   : > { %v5035_v60 = vsel %vm5031_vm0, %v5022_v52, %v5024_v59  ;;  %7764 = vrot.lane.b32.xlu1 %v10993_v17, %s10423_s10  ;;  %v5036_v9 = vsel %vm5031_vm0, %v5024_v59, %v5026_v57 }
 0x152   : > { %7758 = vrot.lane.b32.xlu0 %v10970_v45, %s10423_s10  ;;  %9840 = vmatprep.subr.msk.mxu1 %vm291_vm1, %v5035_v60 }
 0x153   : > { %9841 = vmatpush1.msk.msra.mxu1 %vm291_vm1, %v5034_v61  ;;  %v5030_v62 = vpop.permute.xlu1 %5029 }
 0x154   : > { %9842 = vmatmul.mubr.msk.f32.vlgmr.msra.gmra.mrb[0].mxu1 %vm287_vm2, %v9836_v56  ;;  %v5028_v63 = vpop.permute.xlu0 %5027  ;;  %10118 = vmatprep.subr.mxu1 %v10400_v0 }
 0x155   : > { %v5037_v7 = vsel %vm5031_vm0, %v5026_v57, %v5028_v63  ;;  %v5038_v8 = vsel %vm5031_vm0, %v5028_v63, %v5030_v62  ;;  %7768 = vrot.lane.b32.xlu1 %v11014_v58, %s10423_s10  ;;  %10120 = vmatprep.mubr.msk.f32.mxu1 %vm10410_vm3, %v10400_v0 }
 0x156   : > { %7766 = vrot.lane.b32.xlu0 %v11003_v54, %s10423_s10  ;;  %9843 = vmatprep.subr.msk.mxu0 %vm291_vm1, %v5037_v7 }
 0x157   : > { %10119 = vmatpush3.msk.msra.mxu1 %vm291_vm1, %v5038_v8  ;;  %9844 = vmatpush1.msk.msra.mxu0 %vm291_vm1, %v5036_v9  ;;  %v5365_v10 = vpop.permute.xlu1 %5364 }
 0x158   : > { %10121 = vmatmul.mubr.msk.f32.vlgmr.msra.gmra.mrb[30].mxu1 %vm287_vm2, %v9836_v56  ;;  %v5363_v12 = vpop.permute.xlu0 %5362  ;;  %9845 = vmatmul.mubr.msk.f32.vlgmr.msra.gmra.mrb[2].mxu0 %vm287_vm2, %v9836_v56 }
 0x159   : > { %v5378_v13 = vsel %vm5376_vm4, %v5363_v12, %v5365_v10  ;;  %8101 = vrot.lane.b32.xlu1 %v10983_v49, %s10424_s13  ;;  %5536 = vmatprep.mubr.f32.mxu1 %v10400_v0 }
 0x15a   : > { %7770 = vrot.lane.b32.xlu0 %v7748_v11, %s10423_s10  ;;  %9849 = vmatprep.subr.msk.mxu0 %vm291_vm1, %v5378_v13 }
 0x15b   : > { %v5367_v14 = vpop.permute.xlu1 %5366  ;;  %5465 = vmatprep.mubr.f32.mxu0 %v10400_v0 }
 0x15c   : > { %v5361_v15 = vpop.permute.xlu0 %5360  ;;  %v5379_v20 = vsel %vm5376_vm4, %v5365_v10, %v5367_v14 }
 0x15d   : > { %v5377_v5 = vsel %vm5376_vm4, %v5361_v15, %v5363_v12  ;;  %8099 = vrot.lane.b32.xlu1 %v10970_v45, %s10424_s13 }
 0x15e   : > { %8103 = vrot.lane.b32.xlu0 %v10979_v48, %s10424_s13  ;;  %9850 = vmatpush1.msk.msra.mxu0 %vm291_vm1, %v5377_v5 }
 0x15f   : > { %v5371_v4 = vpop.permute.xlu1 %5370  ;;  %9851 = vmatmul.mubr.msk.f32.vlgmr.msra.gmra.mrb[0].mxu0 %vm287_vm2, %v9848_v16 }
 0x160   : > { %v5369_v18 = vpop.permute.xlu0 %5368  ;;  %5607 = vmatprep.mubr.f32.mxu0 %v10400_v0 }
 0x161   : > { %v5380_v19 = vsel %vm5376_vm4, %v5367_v14, %v5369_v18  ;;  %8107 = vrot.lane.b32.xlu1 %v11003_v54, %s10424_s13  ;;  %v5381_v6 = vsel %vm5376_vm4, %v5369_v18, %v5371_v4 }
 0x162   : > { %8105 = vrot.lane.b32.xlu0 %v10993_v17, %s10424_s13  ;;  %9852 = vmatprep.subr.msk.mxu1 %vm291_vm1, %v5380_v19 }
 0x163   : > { %9853 = vmatpush1.msk.msra.mxu1 %vm291_vm1, %v5379_v20  ;;  %v5375_v22 = vpop.permute.xlu1 %5374 }
 0x164   : > { %9854 = vmatmul.mubr.msk.f32.vlgmr.msra.gmra.mrb[0].mxu1 %vm287_vm2, %v9848_v16  ;;  %v5373_v24 = vpop.permute.xlu0 %5372  ;;  %10123 = vmatprep.subr.mxu1 %v10400_v0 }
 0x165   : > { %v5382_v1 = vsel %vm5376_vm4, %v5371_v4, %v5373_v24  ;;  %v5383_v25 = vsel %vm5376_vm4, %v5373_v24, %v5375_v22  ;;  %8111 = vrot.lane.b32.xlu1 %v8089_v21, %s10424_s13  ;;  %10125 = vmatprep.mubr.msk.f32.mxu1 %vm10410_vm3, %v10400_v0  ;;  %v9112_v4 = vld [vmem:[%s10480_s26 + $0x1c] sm:$0xf] }
 0x166   : > { %8109 = vrot.lane.b32.xlu0 %v11014_v58, %s10424_s13  ;;  %9855 = vmatprep.subr.msk.mxu0 %vm291_vm1, %v5382_v1 }
 0x167   : > { %10124 = vmatpush3.msk.msra.mxu1 %vm291_vm1, %v5383_v25  ;;  %9856 = vmatpush1.msk.msra.mxu0 %vm291_vm1, %v5381_v6  ;;  %v5710_v26 = vpop.permute.xlu1 %5709 }
 0x168   : > { %10126 = vmatmul.mubr.msk.f32.vlgmr.msra.gmra.mrb[32].mxu1 %vm287_vm2, %v9848_v16  ;;  %v5708_v3 = vpop.permute.xlu0 %5707  ;;  %9857 = vmatmul.mubr.msk.f32.vlgmr.msra.gmra.mrb[2].mxu0 %vm287_vm2, %v9848_v16 }
 0x169   : > { %v5723_v27 = vsel %vm5721_vm5, %v5708_v3, %v5710_v26  ;;  %8444 = vrot.lane.b32.xlu1 %v10979_v48, %s10425_s16  ;;  %5881 = vmatprep.mubr.f32.mxu1 %v10400_v0 }
 0x16a   : > { %8442 = vrot.lane.b32.xlu0 %v10983_v49, %s10425_s16  ;;  %9861 = vmatprep.subr.msk.mxu0 %vm291_vm1, %v5723_v27 }
 0x16b   : > { %v5712_v2 = vpop.permute.xlu1 %5711  ;;  %5810 = vmatprep.mubr.f32.mxu0 %v10400_v0 }
 0x16c   : > { %v5706_v28 = vpop.permute.xlu0 %5705  ;;  %v5724_v34 = vsel %vm5721_vm5, %v5710_v26, %v5712_v2 }
 0x16d   : > { %v5722_v29 = vsel %vm5721_vm5, %v5706_v28, %v5708_v3  ;;  %8446 = vrot.lane.b32.xlu1 %v10993_v17, %s10425_s16 }
 0x16e   : > { %8440 = vrot.lane.b32.xlu0 %v10970_v45, %s10425_s16  ;;  %9862 = vmatpush1.msk.msra.mxu0 %vm291_vm1, %v5722_v29 }
 0x16f   : > { %v5716_v31 = vpop.permute.xlu1 %5715  ;;  %9863 = vmatmul.mubr.msk.f32.vlgmr.msra.gmra.mrb[0].mxu0 %vm287_vm2, %v9860_v30 }
 0x170   : > { %v5714_v32 = vpop.permute.xlu0 %5713  ;;  %5952 = vmatprep.mubr.f32.mxu0 %v10400_v0 }
 0x171   : > { %v5725_v33 = vsel %vm5721_vm5, %v5712_v2, %v5714_v32  ;;  %8450 = vrot.lane.b32.xlu1 %v11014_v58, %s10425_s16  ;;  %v5726_v40 = vsel %vm5721_vm5, %v5714_v32, %v5716_v31 }
 0x172   : > { %8448 = vrot.lane.b32.xlu0 %v11003_v54, %s10425_s16  ;;  %9864 = vmatprep.subr.msk.mxu1 %vm291_vm1, %v5725_v33 }
 0x173   : > { %9865 = vmatpush1.msk.msra.mxu1 %vm291_vm1, %v5724_v34  ;;  %v5720_v35 = vpop.permute.xlu1 %5719 }
 0x174   : > { %9866 = vmatmul.mubr.msk.f32.vlgmr.msra.gmra.mrb[0].mxu1 %vm287_vm2, %v9860_v30  ;;  %v5718_v37 = vpop.permute.xlu0 %5717  ;;  %10128 = vmatprep.subr.mxu1 %v10400_v0 }
 0x175   : > { %v5727_v38 = vsel %vm5721_vm5, %v5716_v31, %v5718_v37  ;;  %v5728_v39 = vsel %vm5721_vm5, %v5718_v37, %v5720_v35  ;;  %8783 = vrot.lane.b32.xlu1 %v10983_v49, %s10426_s19  ;;  %10130 = vmatprep.mubr.msk.f32.mxu1 %vm10410_vm3, %v10400_v0 }
 0x176   : > { %8452 = vrot.lane.b32.xlu0 %v8430_v36, %s10425_s16  ;;  %9867 = vmatprep.subr.msk.mxu0 %vm291_vm1, %v5727_v38 }
 0x177   : > { %10129 = vmatpush3.msk.msra.mxu1 %vm291_vm1, %v5728_v39  ;;  %9868 = vmatpush1.msk.msra.mxu0 %vm291_vm1, %v5726_v40  ;;  %v6055_v41 = vpop.permute.xlu1 %6054 }
 0x178   : > { %10131 = vmatmul.mubr.msk.f32.vlgmr.msra.gmra.mrb[34].mxu1 %vm287_vm2, %v9860_v30  ;;  %v6053_v42 = vpop.permute.xlu0 %6052  ;;  %9869 = vmatmul.mubr.msk.f32.vlgmr.msra.gmra.mrb[2].mxu0 %vm287_vm2, %v9860_v30  ;;  %v9896_v30 = vld [vmem:[%s11596_s1 + $0x98] sm:$0xff] }
 0x179   : > { %v6068_v43 = vsel %vm6066_vm6, %v6053_v42, %v6055_v41  ;;  %8781 = vrot.lane.b32.xlu1 %v10970_v45, %s10426_s19  ;;  %6226 = vmatprep.mubr.f32.mxu1 %v10400_v0 }
 0x17a   : > { %8785 = vrot.lane.b32.xlu0 %v10979_v48, %s10426_s19  ;;  %9873 = vmatprep.subr.msk.mxu0 %vm291_vm1, %v6068_v43 }
 0x17b   : > { %v6057_v44 = vpop.permute.xlu1 %6056  ;;  %6155 = vmatprep.mubr.f32.mxu0 %v10400_v0 }
 0x17c   : > { %v6051_v46 = vpop.permute.xlu0 %6050  ;;  %v6069_v55 = vsel %vm6066_vm6, %v6055_v41, %v6057_v44 }
 0x17d   : > { %v6067_v47 = vsel %vm6066_vm6, %v6051_v46, %v6053_v42  ;;  %8789 = vrot.lane.b32.xlu1 %v11003_v54, %s10426_s19 }
 0x17e   : > { %8787 = vrot.lane.b32.xlu0 %v10993_v17, %s10426_s19  ;;  %9874 = vmatpush1.msk.msra.mxu0 %vm291_vm1, %v6067_v47 }
 0x17f   : > { %v6061_v23 = vpop.permute.xlu1 %6060  ;;  %9875 = vmatmul.mubr.msk.f32.vlgmr.msra.gmra.mrb[0].mxu0 %vm287_vm2, %v9872_v51 }
 0x180   : > { %v6059_v52 = vpop.permute.xlu0 %6058  ;;  %6297 = vmatprep.mubr.f32.mxu0 %v10400_v0 }
 0x181   : > { %v6070_v53 = vsel %vm6066_vm6, %v6057_v44, %v6059_v52  ;;  %8793 = vrot.lane.b32.xlu1 %v8771_v50, %s10426_s19  ;;  %v6071_v61 = vsel %vm6066_vm6, %v6059_v52, %v6061_v23  ;;  %v9908_v50 = vld [vmem:[%s11596_s1 + $0xa0] sm:$0xff] }
 0x182   : > { %8791 = vrot.lane.b32.xlu0 %v11014_v58, %s10426_s19  ;;  %9876 = vmatprep.subr.msk.mxu1 %vm291_vm1, %v6070_v53 }
 0x183   : > { %9877 = vmatpush1.msk.msra.mxu1 %vm291_vm1, %v6069_v55  ;;  %v6065_v56 = vpop.permute.xlu1 %6064 }
 0x184   : > { %9878 = vmatmul.mubr.msk.f32.vlgmr.msra.gmra.mrb[0].mxu1 %vm287_vm2, %v9872_v51  ;;  %v6063_v57 = vpop.permute.xlu0 %6062  ;;  %10133 = vmatprep.subr.mxu1 %v10400_v0 }
 0x185   : > { %v6072_v59 = vsel %vm6066_vm6, %v6061_v23, %v6063_v57  ;;  %v6073_v60 = vsel %vm6066_vm6, %v6063_v57, %v6065_v56  ;;  %9126 = vrot.lane.b32.xlu1 %v10979_v48, %s10427_s24  ;;  %10135 = vmatprep.mubr.msk.f32.mxu1 %vm10410_vm3, %v10400_v0  ;;  %v585_v48 = vpop.f32.mrb[2].mxu1 }
 0x186   : > { %9124 = vrot.lane.b32.xlu0 %v10983_v49, %s10427_s24  ;;  %9879 = vmatprep.subr.msk.mxu0 %vm291_vm1, %v6072_v59  ;;  %v10052_v49 = vpop.f32.mrb[3].mxu1 }
 0x187   : > { %10134 = vmatpush3.msk.msra.mxu1 %vm291_vm1, %v6073_v60  ;;  %9880 = vmatpush1.msk.msra.mxu0 %vm291_vm1, %v6071_v61  ;;  %v6399_v62 = vpop.permute.xlu1 %6398  ;;  %v885_v8 = vpop.f32.mrb[4].mxu1 }
 0x188   : > { %10136 = vmatmul.mubr.msk.f32.vlgmr.msra.gmra.mrb[36].mxu1 %vm287_vm2, %v9872_v51  ;;  %v6397_v63 = vpop.permute.xlu0 %6396  ;;  %9881 = vmatmul.mubr.msk.f32.vlgmr.msra.gmra.mrb[2].mxu0 %vm287_vm2, %v9872_v51  ;;  %v886_v10 = vadd.f32 %v885_v8, %v585_v48  ;;  %v10057_v11 = vpop.f32.mrb[5].mxu1 }
 0x189   : > { %v6410_v7 = vsel %vm6408_vm7, %v6397_v63, %v6399_v62  ;;  %9128 = vrot.lane.b32.xlu1 %v10993_v17, %s10427_s24  ;;  %6567 = vmatprep.mubr.f32.mxu1 %v10400_v0  ;;  %v1219_v13 = vpop.f32.mrb[6].mxu1 }
 0x18a   : > { %9122 = vrot.lane.b32.xlu0 %v10970_v45, %s10427_s24  ;;  %9885 = vmatprep.subr.msk.mxu0 %vm291_vm1, %v6410_v7  ;;  %v1229_v17 = vadd.f32 %v1219_v13, %v886_v10  ;;  %v10062_v15 = vpop.f32.mrb[7].mxu1  ;;  %v9884_v45 = vld [vmem:[%s11596_s1 + $0x90] sm:$0xff] }
 0x18b   : > { %v6401_v9 = vpop.permute.xlu1 %6400  ;;  %6496 = vmatprep.mubr.f32.mxu0 %v10400_v0  ;;  %v1560_v5 = vpop.f32.mrb[8].mxu1 }
 0x18c   : > { %v6395_v12 = vpop.permute.xlu0 %6394  ;;  %v1570_v18 = vadd.f32 %v1560_v5, %v1229_v17  ;;  %v10067_v19 = vpop.f32.mrb[9].mxu1 }
 0x18d   : > { %v6409_v14 = vsel %vm6408_vm7, %v6395_v12, %v6397_v63  ;;  %9132 = vrot.lane.b32.xlu1 %v11014_v58, %s10427_s24 }
 0x18e   : > { %9130 = vrot.lane.b32.xlu0 %v11003_v54, %s10427_s24  ;;  %9886 = vmatpush1.msk.msra.mxu0 %vm291_vm1, %v6409_v14  ;;  %v6411_v54 = vsel %vm6408_vm7, %v6399_v62, %v6401_v9 }
 0x18f   : > { %v6405_v16 = vpop.permute.xlu1 %6404  ;;  %9887 = vmatmul.mubr.msk.f32.vlgmr.msra.gmra.mrb[0].mxu0 %vm287_vm2, %v9884_v45 }
 0x190   : > { %v6403_v20 = vpop.permute.xlu0 %6402  ;;  %6638 = vmatprep.mubr.f32.mxu0 %v10400_v0 }
 0x191   : > { %v6412_v58 = vsel %vm6408_vm7, %v6401_v9, %v6403_v20  ;;  %v6413_v26 = vsel %vm6408_vm7, %v6403_v20, %v6405_v16  ;;  %v9920_v9 = vld [vmem:[%s11596_s1 + $0xa8] sm:$0xff] }
 0x192   : > { %9134 = vrot.lane.b32.xlu0 %v9112_v4, %s10427_s24  ;;  %9888 = vmatprep.subr.msk.mxu1 %vm291_vm1, %v6412_v58  ;;  %v1901_v21 = vpop.f32.mrb[10].mxu1 }
 0x193   : > { %9889 = vmatpush1.msk.msra.mxu1 %vm291_vm1, %v6411_v54  ;;  %v6738_v22 = vpop.permute.xlu1 %6737  ;;  %v1911_v24 = vadd.f32 %v1901_v21, %v1570_v18  ;;  %v10072_v1 = vpop.f32.mrb[11].mxu1  ;;  %v9932_v21 = vld [vmem:[%s11596_s1 + $0xb0] sm:$0xff] }
 0x194   : > { %9890 = vmatmul.mubr.msk.f32.vlgmr.msra.gmra.mrb[0].mxu1 %vm287_vm2, %v9884_v45  ;;  %10138 = vmatprep.subr.mxu1 %v10400_v0  ;;  %v6407_v25 = vpop.permute.xlu0 %6406 }
 0x195   : > { %v6414_v6 = vsel %vm6408_vm7, %v6405_v16, %v6407_v25  ;;  %10139 = vmatpush3.msk.msra.mxu1 %vm291_vm1, %v6407_v25  ;;  %10140 = vmatprep.mubr.msk.f32.mxu1 %vm10410_vm3, %v10400_v0 }
 0x196   : > { %9891 = vmatprep.subr.msk.mxu0 %vm291_vm1, %v6414_v6 }
 0x197   : > { %9892 = vmatpush1.msk.msra.mxu0 %vm291_vm1, %v6413_v26  ;;  %v6736_v3 = vpop.permute.xlu1 %6735 }
 0x198   : > { %v6750_v27 = vsel %vm6749_vm8, %v6736_v3, %v6738_v22  ;;  %10141 = vmatmul.mubr.msk.f32.vlgmr.msra.gmra.mrb[38].mxu1 %vm287_vm2, %v9884_v45  ;;  %v6740_v2 = vpop.permute.xlu0 %6739  ;;  %9893 = vmatmul.mubr.msk.f32.vlgmr.msra.gmra.mrb[2].mxu0 %vm287_vm2, %v9884_v45 }
 0x199   : > { %v6751_v28 = vsel %vm6749_vm8, %v6738_v22, %v6740_v2  ;;  %6908 = vmatprep.mubr.f32.mxu1 %v10400_v0  ;;  %6837 = vmatprep.mubr.f32.mxu0 %v10400_v0 }
 0x19a   : > { %9897 = vmatprep.subr.msk.mxu0 %vm291_vm1, %v6751_v28  ;;  %v9450_v28 = vld [vmem:[%s11597_s2] sm:$0xff] }
 0x19b   : > { %9898 = vmatpush1.msk.msra.mxu0 %vm291_vm1, %v6750_v27  ;;  %v6744_v29 = vpop.permute.xlu1 %6743 }
 0x19c   : > { %v6742_v31 = vpop.permute.xlu0 %6741  ;;  %9899 = vmatmul.mubr.msk.f32.vlgmr.msra.gmra.mrb[0].mxu0 %vm287_vm2, %v9896_v30 }
 0x19d   : > { %v6752_v32 = vsel %vm6749_vm8, %v6740_v2, %v6742_v31  ;;  %v6753_v33 = vsel %vm6749_vm8, %v6742_v31, %v6744_v29  ;;  %6979 = vmatprep.mubr.f32.mxu0 %v10400_v0  ;;  %v10428_v31 = vmov 0  }
 0x19e   : > { %9900 = vmatprep.subr.msk.mxu1 %vm291_vm1, %v6753_v33  ;;  %10378 = vset.pattern.permute.xlu1 %v10428_v31 }
 0x19f   : > { %9901 = vmatpush1.msk.msra.mxu1 %vm291_vm1, %v6752_v32  ;;  %v6748_v34 = vpop.permute.xlu1 %6747  ;;  %v2242_v35 = vpop.f32.mrb[12].mxu1  ;;  %9453 = vperm.xlu1 %10378, %v9450_v28  }
 0x1a0   : > { %9902 = vmatmul.mubr.msk.f32.vlgmr.msra.gmra.mrb[0].mxu1 %vm287_vm2, %v9896_v30  ;;  %v6746_v36 = vpop.permute.xlu0 %6745  ;;  %10143 = vmatprep.subr.mxu1 %v10400_v0  ;;  %v2252_v37 = vadd.f32 %v2242_v35, %v1911_v24  ;;  %v10077_v38 = vpop.f32.mrb[13].mxu1 }
 0x1a1   : > { %v6754_v39 = vsel %vm6749_vm8, %v6744_v29, %v6746_v36  ;;  %v6755_v40 = vsel %vm6749_vm8, %v6746_v36, %v6748_v34  ;;  %10144 = vmatpush3.msk.msra.mxu1 %vm291_vm1, %v6748_v34  ;;  %10145 = vmatprep.mubr.msk.f32.mxu1 %vm10410_vm3, %v10400_v0 }
 0x1a2   : > { %9903 = vmatprep.subr.msk.mxu0 %vm291_vm1, %v6755_v40  ;;  %10379 = vset.pattern.permute.xlu0 %v10428_v31 }
 0x1a3   : > { %9904 = vmatpush1.msk.msra.mxu0 %vm291_vm1, %v6754_v39  ;;  %v7081_v41 = vpop.permute.xlu1 %7080 }
 0x1a4   : > { %10146 = vmatmul.mubr.msk.f32.vlgmr.msra.gmra.mrb[40].mxu1 %vm287_vm2, %v9896_v30  ;;  %v7079_v42 = vpop.permute.xlu0 %7078  ;;  %9905 = vmatmul.mubr.msk.f32.vlgmr.msra.gmra.mrb[2].mxu0 %vm287_vm2, %v9896_v30 }
 0x1a5   : > { %v7092_v43 = vsel %vm7090_vm9, %v7079_v42, %v7081_v41  ;;  %7249 = vmatprep.mubr.f32.mxu1 %v10400_v0  ;;  %7178 = vmatprep.mubr.f32.mxu0 %v10400_v0 }
 0x1a6   : > { %9909 = vmatprep.subr.msk.mxu0 %vm291_vm1, %v7092_v43 }
 0x1a7   : > { %v7083_v44 = vpop.permute.xlu1 %7082 }
 0x1a8   : > { %v7077_v46 = vpop.permute.xlu0 %7076  ;;  %v7093_v57 = vsel %vm7090_vm9, %v7081_v41, %v7083_v44 }
 0x1a9   : > { %v7091_v47 = vsel %vm7090_vm9, %v7077_v46, %v7079_v42 }
 0x1aa   : > { %9910 = vmatpush1.msk.msra.mxu0 %vm291_vm1, %v7091_v47 }
 0x1ab   : > { %v7087_v51 = vpop.permute.xlu1 %7086  ;;  %9911 = vmatmul.mubr.msk.f32.vlgmr.msra.gmra.mrb[0].mxu0 %vm287_vm2, %v9908_v50  ;;  %v2583_v23 = vpop.f32.mrb[14].mxu1 }
 0x1ac   : > { %v7085_v52 = vpop.permute.xlu0 %7084  ;;  %7320 = vmatprep.mubr.f32.mxu0 %v10400_v0  ;;  %v2593_v53 = vadd.f32 %v2583_v23, %v2252_v37  ;;  %v10082_v55 = vpop.f32.mrb[15].mxu1  ;;  %v9944_v37 = vld [vmem:[%s11596_s1 + $0xb8] sm:$0xff] }
 0x1ad   : > { %v7094_v56 = vsel %vm7090_vm9, %v7083_v44, %v7085_v52  ;;  %v7095_v62 = vsel %vm7090_vm9, %v7085_v52, %v7087_v51 }
 0x1ae   : > { %9912 = vmatprep.subr.msk.mxu1 %vm291_vm1, %v7094_v56 }
 0x1af   : > { %9913 = vmatpush1.msk.msra.mxu1 %vm291_vm1, %v7093_v57  ;;  %v7420_v59 = vpop.permute.xlu1 %7419  ;;  %v9956_v57 = vld [vmem:[%s11596_s1 + $0xc0] sm:$0xff] }
 0x1b0   : > { %9914 = vmatmul.mubr.msk.f32.vlgmr.msra.gmra.mrb[0].mxu1 %vm287_vm2, %v9908_v50  ;;  %10148 = vmatprep.subr.mxu1 %v10400_v0  ;;  %v7089_v60 = vpop.permute.xlu0 %7088 }
 0x1b1   : > { %v7096_v61 = vsel %vm7090_vm9, %v7087_v51, %v7089_v60  ;;  %10149 = vmatpush3.msk.msra.mxu1 %vm291_vm1, %v7089_v60  ;;  %10150 = vmatprep.mubr.msk.f32.mxu1 %vm10410_vm3, %v10400_v0 }
 0x1b2   : > { %9915 = vmatprep.subr.msk.mxu0 %vm291_vm1, %v7096_v61 }
 0x1b3   : > { %9916 = vmatpush1.msk.msra.mxu0 %vm291_vm1, %v7095_v62  ;;  %v7418_v63 = vpop.permute.xlu1 %7417 }
 0x1b4   : > { %v7432_v48 = vsel %vm7431_vm10, %v7418_v63, %v7420_v59  ;;  %10151 = vmatmul.mubr.msk.f32.vlgmr.msra.gmra.mrb[42].mxu1 %vm287_vm2, %v9908_v50  ;;  %v7422_v7 = vpop.permute.xlu0 %7421  ;;  %9917 = vmatmul.mubr.msk.f32.vlgmr.msra.gmra.mrb[2].mxu0 %vm287_vm2, %v9908_v50 }
 0x1b5   : > { %v7433_v49 = vsel %vm7431_vm10, %v7420_v59, %v7422_v7  ;;  %7590 = vmatprep.mubr.f32.mxu1 %v10400_v0  ;;  %7519 = vmatprep.mubr.f32.mxu0 %v10400_v0 }
 0x1b6   : > { %9921 = vmatprep.subr.msk.mxu0 %vm291_vm1, %v7433_v49 }
 0x1b7   : > { %9922 = vmatpush1.msk.msra.mxu0 %vm291_vm1, %v7432_v48  ;;  %v7426_v8 = vpop.permute.xlu1 %7425 }
 0x1b8   : > { %v7424_v10 = vpop.permute.xlu0 %7423  ;;  %9923 = vmatmul.mubr.msk.f32.vlgmr.msra.gmra.mrb[0].mxu0 %vm287_vm2, %v9920_v9 }
 0x1b9   : > { %v7434_v11 = vsel %vm7431_vm10, %v7422_v7, %v7424_v10  ;;  %v7435_v12 = vsel %vm7431_vm10, %v7424_v10, %v7426_v8  ;;  %7661 = vmatprep.mubr.f32.mxu0 %v10400_v0 }
 0x1ba   : > { %9924 = vmatprep.subr.msk.mxu1 %vm291_vm1, %v7435_v12 }
 0x1bb   : > { %9925 = vmatpush1.msk.msra.mxu1 %vm291_vm1, %v7434_v11  ;;  %v7430_v13 = vpop.permute.xlu1 %7429  ;;  %v2924_v14 = vpop.f32.mrb[16].mxu1 }
 0x1bc   : > { %9926 = vmatmul.mubr.msk.f32.vlgmr.msra.gmra.mrb[0].mxu1 %vm287_vm2, %v9920_v9  ;;  %v7428_v17 = vpop.permute.xlu0 %7427  ;;  %10153 = vmatprep.subr.mxu1 %v10400_v0  ;;  %v2934_v15 = vadd.f32 %v2924_v14, %v2593_v53  ;;  %v10087_v45 = vpop.f32.mrb[17].mxu1 }
 0x1bd   : > { %v7436_v5 = vsel %vm7431_vm10, %v7426_v8, %v7428_v17  ;;  %v7437_v16 = vsel %vm7431_vm10, %v7428_v17, %v7430_v13  ;;  %10154 = vmatpush3.msk.msra.mxu1 %vm291_vm1, %v7430_v13  ;;  %10155 = vmatprep.mubr.msk.f32.mxu1 %vm10410_vm3, %v10400_v0 }
 0x1be   : > { %9927 = vmatprep.subr.msk.mxu0 %vm291_vm1, %v7437_v16 }
 0x1bf   : > { %9928 = vmatpush1.msk.msra.mxu0 %vm291_vm1, %v7436_v5  ;;  %v7763_v4 = vpop.permute.xlu1 %7762 }
 0x1c0   : > { %10156 = vmatmul.mubr.msk.f32.vlgmr.msra.gmra.mrb[44].mxu1 %vm287_vm2, %v9920_v9  ;;  %v7761_v18 = vpop.permute.xlu0 %7760  ;;  %9929 = vmatmul.mubr.msk.f32.vlgmr.msra.gmra.mrb[2].mxu0 %vm287_vm2, %v9920_v9 }
 0x1c1   : > { %v7774_v19 = vsel %vm7772_vm11, %v7761_v18, %v7763_v4  ;;  %7931 = vmatprep.mubr.f32.mxu1 %v10400_v0  ;;  %7860 = vmatprep.mubr.f32.mxu0 %v10400_v0 }
 0x1c2   : > { %9933 = vmatprep.subr.msk.mxu0 %vm291_vm1, %v7774_v19 }
 0x1c3   : > { %v7765_v20 = vpop.permute.xlu1 %7764 }
 0x1c4   : > { %v7759_v58 = vpop.permute.xlu0 %7758  ;;  %v7775_v3 = vsel %vm7772_vm11, %v7763_v4, %v7765_v20 }
 0x1c5   : > { %v7773_v54 = vsel %vm7772_vm11, %v7759_v58, %v7761_v18 }
 0x1c6   : > { %9934 = vmatpush1.msk.msra.mxu0 %vm291_vm1, %v7773_v54 }
 0x1c7   : > { %v7769_v22 = vpop.permute.xlu1 %7768  ;;  %9935 = vmatmul.mubr.msk.f32.vlgmr.msra.gmra.mrb[0].mxu0 %vm287_vm2, %v9932_v21  ;;  %v3265_v24 = vpop.f32.mrb[18].mxu1 }
 0x1c8   : > { %v7767_v1 = vpop.permute.xlu0 %7766  ;;  %8002 = vmatprep.mubr.f32.mxu0 %v10400_v0  ;;  %v3275_v25 = vadd.f32 %v3265_v24, %v2934_v15  ;;  %v10092_v6 = vpop.f32.mrb[19].mxu1  ;;  %v9968_v15 = vld [vmem:[%s11596_s1 + $0xc8] sm:$0xff] }
 0x1c9   : > { %v7776_v26 = vsel %vm7772_vm11, %v7765_v20, %v7767_v1  ;;  %v7777_v30 = vsel %vm7772_vm11, %v7767_v1, %v7769_v22  ;;  %v9980_v1 = vld [vmem:[%s11596_s1 + $0xd0] sm:$0xff] }
 0x1ca   : > { %9936 = vmatprep.subr.msk.mxu1 %vm291_vm1, %v7776_v26 }
 0x1cb   : > { %9937 = vmatpush1.msk.msra.mxu1 %vm291_vm1, %v7775_v3  ;;  %v8102_v27 = vpop.permute.xlu1 %8101 }
 0x1cc   : > { %9938 = vmatmul.mubr.msk.f32.vlgmr.msra.gmra.mrb[0].mxu1 %vm287_vm2, %v9932_v21  ;;  %10158 = vmatprep.subr.mxu1 %v10400_v0  ;;  %v7771_v2 = vpop.permute.xlu0 %7770 }
 0x1cd   : > { %v7778_v29 = vsel %vm7772_vm11, %v7769_v22, %v7771_v2  ;;  %10159 = vmatpush3.msk.msra.mxu1 %vm291_vm1, %v7771_v2  ;;  %10160 = vmatprep.mubr.msk.f32.mxu1 %vm10410_vm3, %v10400_v0 }
 0x1ce   : > { %9939 = vmatprep.subr.msk.mxu0 %vm291_vm1, %v7778_v29 }
 0x1cf   : > { %9940 = vmatpush1.msk.msra.mxu0 %vm291_vm1, %v7777_v30  ;;  %v8100_v32 = vpop.permute.xlu1 %8099 }
 0x1d0   : > { %v8114_v33 = vsel %vm8113_vm12, %v8100_v32, %v8102_v27  ;;  %10161 = vmatmul.mubr.msk.f32.vlgmr.msra.gmra.mrb[46].mxu1 %vm287_vm2, %v9932_v21  ;;  %v8104_v34 = vpop.permute.xlu0 %8103  ;;  %9941 = vmatmul.mubr.msk.f32.vlgmr.msra.gmra.mrb[2].mxu0 %vm287_vm2, %v9932_v21 }
 0x1d1   : > { %v8115_v35 = vsel %vm8113_vm12, %v8102_v27, %v8104_v34  ;;  %8272 = vmatprep.mubr.f32.mxu1 %v10400_v0  ;;  %8201 = vmatprep.mubr.f32.mxu0 %v10400_v0 }
 0x1d2   : > { %9945 = vmatprep.subr.msk.mxu0 %vm291_vm1, %v8115_v35 }
 0x1d3   : > { %9946 = vmatpush1.msk.msra.mxu0 %vm291_vm1, %v8114_v33  ;;  %v8108_v36 = vpop.permute.xlu1 %8107 }
 0x1d4   : > { %v8106_v38 = vpop.permute.xlu0 %8105  ;;  %9947 = vmatmul.mubr.msk.f32.vlgmr.msra.gmra.mrb[0].mxu0 %vm287_vm2, %v9944_v37 }
 0x1d5   : > { %v8116_v39 = vsel %vm8113_vm12, %v8104_v34, %v8106_v38  ;;  %v8117_v40 = vsel %vm8113_vm12, %v8106_v38, %v8108_v36  ;;  %8343 = vmatprep.mubr.f32.mxu0 %v10400_v0 }
 0x1d6   : > { %9948 = vmatprep.subr.msk.mxu1 %vm291_vm1, %v8117_v40 }
 0x1d7   : > { %9949 = vmatpush1.msk.msra.mxu1 %vm291_vm1, %v8116_v39  ;;  %v8112_v41 = vpop.permute.xlu1 %8111 }
 0x1d8   : > { %9950 = vmatmul.mubr.msk.f32.vlgmr.msra.gmra.mrb[0].mxu1 %vm287_vm2, %v9944_v37  ;;  %v8110_v42 = vpop.permute.xlu0 %8109  ;;  %10163 = vmatprep.subr.mxu1 %v10400_v0 }
 0x1d9   : > { %v8118_v43 = vsel %vm8113_vm12, %v8108_v36, %v8110_v42  ;;  %v8119_v44 = vsel %vm8113_vm12, %v8110_v42, %v8112_v41  ;;  %10164 = vmatpush3.msk.msra.mxu1 %vm291_vm1, %v8112_v41  ;;  %10165 = vmatprep.mubr.msk.f32.mxu1 %vm10410_vm3, %v10400_v0  ;;  %v3610_v46 = vpop.f32.mrb[20].mxu1 }
 0x1da   : > { %9951 = vmatprep.subr.msk.mxu0 %vm291_vm1, %v8119_v44  ;;  %v3620_v47 = vadd.f32 %v3610_v46, %v3275_v25  ;;  %v10097_v50 = vpop.f32.mrb[21].mxu1 }
 0x1db   : > { %9952 = vmatpush1.msk.msra.mxu0 %vm291_vm1, %v8118_v43  ;;  %v8445_v51 = vpop.permute.xlu1 %8444 }
 0x1dc   : > { %10166 = vmatmul.mubr.msk.f32.vlgmr.msra.gmra.mrb[48].mxu1 %vm287_vm2, %v9944_v37  ;;  %v8443_v23 = vpop.permute.xlu0 %8442  ;;  %9953 = vmatmul.mubr.msk.f32.vlgmr.msra.gmra.mrb[2].mxu0 %vm287_vm2, %v9944_v37 }
 0x1dd   : > { %v8456_v52 = vsel %vm8454_vm13, %v8443_v23, %v8445_v51  ;;  %8613 = vmatprep.mubr.f32.mxu1 %v10400_v0  ;;  %8542 = vmatprep.mubr.f32.mxu0 %v10400_v0 }
 0x1de   : > { %9957 = vmatprep.subr.msk.mxu0 %vm291_vm1, %v8456_v52 }
 0x1df   : > { %v8447_v53 = vpop.permute.xlu1 %8446 }
 0x1e0   : > { %v8441_v55 = vpop.permute.xlu0 %8440  ;;  %v8457_v62 = vsel %vm8454_vm13, %v8445_v51, %v8447_v53 }
 0x1e1   : > { %v8455_v56 = vsel %vm8454_vm13, %v8441_v55, %v8443_v23 }
 0x1e2   : > { %9958 = vmatpush1.msk.msra.mxu0 %vm291_vm1, %v8455_v56 }
 0x1e3   : > { %v8451_v59 = vpop.permute.xlu1 %8450  ;;  %9959 = vmatmul.mubr.msk.f32.vlgmr.msra.gmra.mrb[0].mxu0 %vm287_vm2, %v9956_v57 }
 0x1e4   : > { %v8449_v60 = vpop.permute.xlu0 %8448  ;;  %8684 = vmatprep.mubr.f32.mxu0 %v10400_v0 }
 0x1e5   : > { %v8458_v61 = vsel %vm8454_vm13, %v8447_v53, %v8449_v60  ;;  %v8459_v49 = vsel %vm8454_vm13, %v8449_v60, %v8451_v59 }
 0x1e6   : > { %9960 = vmatprep.subr.msk.mxu1 %vm291_vm1, %v8458_v61 }
 0x1e7   : > { %9961 = vmatpush1.msk.msra.mxu1 %vm291_vm1, %v8457_v62  ;;  %v8784_v63 = vpop.permute.xlu1 %8783 }
 0x1e8   : > { %9962 = vmatmul.mubr.msk.f32.vlgmr.msra.gmra.mrb[0].mxu1 %vm287_vm2, %v9956_v57  ;;  %10168 = vmatprep.subr.mxu1 %v10400_v0  ;;  %v8453_v48 = vpop.permute.xlu0 %8452 }
 0x1e9   : > { %v8460_v7 = vsel %vm8454_vm13, %v8451_v59, %v8453_v48  ;;  %10169 = vmatpush3.msk.msra.mxu1 %vm291_vm1, %v8453_v48  ;;  %10170 = vmatprep.mubr.msk.f32.mxu1 %vm10410_vm3, %v10400_v0 }
 0x1ea   : > { %9963 = vmatprep.subr.msk.mxu0 %vm291_vm1, %v8460_v7  ;;  %v3955_v8 = vpop.f32.mrb[22].mxu1 }
 0x1eb   : > { %9964 = vmatpush1.msk.msra.mxu0 %vm291_vm1, %v8459_v49  ;;  %v8782_v9 = vpop.permute.xlu1 %8781  ;;  %v3965_v10 = vadd.f32 %v3955_v8, %v3620_v47  ;;  %v10102_v11 = vpop.f32.mrb[23].mxu1 }
 0x1ec   : > { %v8796_v12 = vsel %vm8795_vm14, %v8782_v9, %v8784_v63  ;;  %10171 = vmatmul.mubr.msk.f32.vlgmr.msra.gmra.mrb[50].mxu1 %vm287_vm2, %v9956_v57  ;;  %v8786_v13 = vpop.permute.xlu0 %8785  ;;  %9965 = vmatmul.mubr.msk.f32.vlgmr.msra.gmra.mrb[2].mxu0 %vm287_vm2, %v9956_v57 }
 0x1ed   : > { %v8797_v14 = vsel %vm8795_vm14, %v8784_v63, %v8786_v13  ;;  %8954 = vmatprep.mubr.f32.mxu1 %v10400_v0  ;;  %8883 = vmatprep.mubr.f32.mxu0 %v10400_v0 }
 0x1ee   : > { %9969 = vmatprep.subr.msk.mxu0 %vm291_vm1, %v8797_v14 }
 0x1ef   : > { %9970 = vmatpush1.msk.msra.mxu0 %vm291_vm1, %v8796_v12  ;;  %v8790_v17 = vpop.permute.xlu1 %8789 }
 0x1f0   : > { %v8788_v45 = vpop.permute.xlu0 %8787  ;;  %9971 = vmatmul.mubr.msk.f32.vlgmr.msra.gmra.mrb[0].mxu0 %vm287_vm2, %v9968_v15 }
 0x1f1   : > { %v8798_v5 = vsel %vm8795_vm14, %v8786_v13, %v8788_v45  ;;  %v8799_v16 = vsel %vm8795_vm14, %v8788_v45, %v8790_v17  ;;  %9025 = vmatprep.mubr.f32.mxu0 %v10400_v0 }
 0x1f2   : > { %9972 = vmatprep.subr.msk.mxu1 %vm291_vm1, %v8799_v16 }
 0x1f3   : > { %9973 = vmatpush1.msk.msra.mxu1 %vm291_vm1, %v8798_v5  ;;  %v8794_v4 = vpop.permute.xlu1 %8793 }
 0x1f4   : > { %9974 = vmatmul.mubr.msk.f32.vlgmr.msra.gmra.mrb[0].mxu1 %vm287_vm2, %v9968_v15  ;;  %v8792_v18 = vpop.permute.xlu0 %8791  ;;  %10173 = vmatprep.subr.mxu1 %v10400_v0 }
 0x1f5   : > { %v8800_v19 = vsel %vm8795_vm14, %v8790_v17, %v8792_v18  ;;  %v8801_v20 = vsel %vm8795_vm14, %v8792_v18, %v8794_v4  ;;  %10174 = vmatpush3.msk.msra.mxu1 %vm291_vm1, %v8794_v4  ;;  %10175 = vmatprep.mubr.msk.f32.mxu1 %vm10410_vm3, %v10400_v0 }
 0x1f6   : > { %9975 = vmatprep.subr.msk.mxu0 %vm291_vm1, %v8801_v20 }
 0x1f7   : > { %9976 = vmatpush1.msk.msra.mxu0 %vm291_vm1, %v8800_v19  ;;  %v9127_v58 = vpop.permute.xlu1 %9126  ;;  %v9463_v19 = vld [vmem:[%s11600_s5] sm:$0x7f] }
 0x1f8   : > { %10176 = vmatmul.mubr.msk.f32.vlgmr.msra.gmra.mrb[52].mxu1 %vm287_vm2, %v9968_v15  ;;  %v9125_v54 = vpop.permute.xlu0 %9124  ;;  %9977 = vmatmul.mubr.msk.f32.vlgmr.msra.gmra.mrb[2].mxu0 %vm287_vm2, %v9968_v15  ;;  %v9465_v15 = vlaneseq }
 0x1f9   : > { %v9138_v21 = vsel %vm9136_vm15, %v9125_v54, %v9127_v58  ;;  %9224 = vmatprep.mubr.f32.mxu0 %v10400_v0  ;;  %9295 = vmatprep.mubr.f32.mxu1 %v10400_v0 }
 0x1fa   : > { %9981 = vmatprep.subr.msk.mxu0 %vm291_vm1, %v9138_v21  ;;  %v9466_v45 = vshrl.u32 %v9465_v15, 7 }
 0x1fb   : > { %v4300_v22 = vpop.f32.mrb[24].mxu1  ;;  %v9129_v26 = vpop.permute.xlu1 %9128 }
 0x1fc   : > { %v9123_v24 = vpop.permute.xlu0 %9122  ;;  %v4310_v25 = vadd.f32 %v4300_v22, %v3965_v10  ;;  %v10107_v6 = vpop.f32.mrb[25].mxu1  ;;  %v9139_v28 = vsel %vm9136_vm15, %v9127_v58, %v9129_v26  ;;  %v9467_v18 = vsub.s32 0, %v9466_v45  ;;  %v9471_v20 = vsub.s32 1, %v9466_v45 }
 0x1fd   : > { %v9137_v3 = vsel %vm9136_vm15, %v9123_v24, %v9125_v54  ;;  %v9475_v24 = vsub.s32 2, %v9466_v45  ;;  %v9479_v6 = vsub.s32 3, %v9466_v45 }
 0x1fe   : > { %9982 = vmatpush1.msk.msra.mxu0 %vm291_vm1, %v9137_v3  ;;  %v9468_v54 = vrot.slane %v9463_v19, %v9467_v18  ;;  %v9472_v22 = vrot.slane %v9463_v19, %v9471_v20 }
 0x1ff   : > { %9983 = vmatmul.mubr.msk.f32.vlgmr.msra.gmra.mrb[0].mxu0 %vm287_vm2, %v9980_v1  ;;  %v9133_v29 = vpop.permute.xlu1 %9132 }
 0x200   : > { %v9131_v27 = vpop.permute.xlu0 %9130  ;;  %9366 = vmatprep.mubr.f32.mxu0 %v10400_v0 }
 0x201   : > { %v9140_v2 = vsel %vm9136_vm15, %v9129_v26, %v9131_v27  ;;  %v9141_v32 = vsel %vm9136_vm15, %v9131_v27, %v9133_v29 }
 0x202   : > { %9984 = vmatprep.subr.msk.mxu1 %vm291_vm1, %v9140_v2  ;;  %v9476_v2 = vrot.slane %v9463_v19, %v9475_v24 }
 0x203   : > { %9985 = vmatpush1.msk.msra.mxu1 %vm291_vm1, %v9139_v28  ;;  %v9483_v28 = vsub.s32 4, %v9466_v45 }
 0x204   : > { %9986 = vmatmul.mubr.msk.f32.vlgmr.msra.gmra.mrb[0].mxu1 %vm287_vm2, %v9980_v1  ;;  %10178 = vmatprep.subr.mxu1 %v10400_v0  ;;  %v9135_v30 = vpop.permute.xlu0 %9134 }
 0x205   : > { %v9142_v31 = vsel %vm9136_vm15, %v9133_v29, %v9135_v30  ;;  %10179 = vmatpush3.msk.msra.mxu1 %vm291_vm1, %v9135_v30  ;;  %10180 = vmatprep.mubr.msk.f32.mxu1 %vm10410_vm3, %v10400_v0 }
 0x206   : > { %9987 = vmatprep.subr.msk.mxu0 %vm291_vm1, %v9142_v31  ;;  %v9480_v31 = vrot.slane %v9463_v19, %v9479_v6 }
 0x207   : > { %9988 = vmatpush1.msk.msra.mxu0 %vm291_vm1, %v9141_v32  ;;  %v9491_v32 = vsub.s32 6, %v9466_v45  ;;  %vm9512_vm1 = vcmask 261120  }
 0x208   : > { %9989 = vmatmul.mubr.msk.f32.vlgmr.msra.gmra.mrb[2].mxu0 %vm287_vm2, %v9980_v1  ;;  %10181 = vmatmul.mubr.msk.f32.vlgmr.msra.gmra.mrb[54].mxu1 %vm287_vm2, %v9980_v1 }
 0x20b   : > { %v4645_v33 = vpop.f32.mrb[26].mxu1 }
 0x20c   : > { %v4655_v34 = vadd.f32 %v4645_v33, %v4310_v25  ;;  %v10112_v35 = vpop.f32.mrb[27].mxu1  ;;  %v9487_v33 = vsub.s32 5, %v9466_v45  ;;  %v9566_v45 = vld [vmem:[%s11599_s4] sm:$0xff] }
 0x21b   : > { %v4990_v36 = vpop.f32.mrb[28].mxu1 }
 0x21c   : > { %v5000_v37 = vadd.f32 %v4990_v36, %v4655_v34  ;;  %v10117_v38 = vpop.f32.mrb[29].mxu1 }
 0x21e   : > { %v9454_v58 = vpop.permute.xlu1 %9453 }
 0x22b   : > { %v5335_v39 = vpop.f32.mrb[30].mxu1 }
 0x22c   : > { %v5345_v40 = vadd.f32 %v5335_v39, %v5000_v37  ;;  %v10122_v41 = vpop.f32.mrb[31].mxu1 }
 0x23b   : > { %v5680_v0 = vpop.f32.mrb[32].mxu1 }
 0x23c   : > { %v5690_v42 = vadd.f32 %v5680_v0, %v5345_v40  ;;  %v10127_v43 = vpop.f32.mrb[33].mxu1  ;;  %v9484_v40 = vrot.slane %v9463_v19, %v9483_v28 }
 0x24b   : > { %v6025_v44 = vpop.f32.mrb[34].mxu1 }
 0x24c   : > { %v6035_v46 = vadd.f32 %v6025_v44, %v5690_v42  ;;  %v10132_v47 = vpop.f32.mrb[35].mxu1  ;;  %v9492_v44 = vrot.slane %v9463_v19, %v9491_v32 }
 0x25b   : > { %v6370_v50 = vpop.f32.mrb[36].mxu1 }
 0x25c   : > { %v6380_v51 = vadd.f32 %v6370_v50, %v6035_v46  ;;  %v10137_v23 = vpop.f32.mrb[37].mxu1  ;;  %v9488_v46 = vrot.slane %v9463_v19, %v9487_v33 }
 0x26b   : > { %v6711_v52 = vpop.f32.mrb[38].mxu1 }
 0x26c   : > { %v6721_v53 = vadd.f32 %v6711_v52, %v6380_v51  ;;  %v10142_v55 = vpop.f32.mrb[39].mxu1 }
 0x277   : > { %v7052_v56 = vpop.f32.mrb[40].mxu1 }
 0x278   : > { %v7062_v57 = vadd.f32 %v7052_v56, %v6721_v53  ;;  %v10147_v59 = vpop.f32.mrb[41].mxu1 }
 0x287   : > { %v7393_v60 = vpop.f32.mrb[42].mxu1 }
 0x288   : > { %v7403_v61 = vadd.f32 %v7393_v60, %v7062_v57  ;;  %v10152_v62 = vpop.f32.mrb[43].mxu1 }
 0x293   : > { %v7734_v63 = vpop.f32.mrb[44].mxu1 }
 0x294   : > { %v7744_v48 = vadd.f32 %v7734_v63, %v7403_v61  ;;  %v10157_v7 = vpop.f32.mrb[45].mxu1 }
 0x2a3   : > { %v8075_v49 = vpop.f32.mrb[46].mxu1 }
 0x2a4   : > { %v8085_v8 = vadd.f32 %v8075_v49, %v7744_v48  ;;  %v10162_v9 = vpop.f32.mrb[47].mxu1 }
 0x2af   : > { %v8416_v10 = vpop.f32.mrb[48].mxu1 }
 0x2b0   : > { %v8426_v11 = vadd.f32 %v8416_v10, %v8085_v8  ;;  %v10167_v12 = vpop.f32.mrb[49].mxu1 }
 0x2bf   : > { %v8757_v13 = vpop.f32.mrb[50].mxu1 }
 0x2c0   : > { %v8767_v14 = vadd.f32 %v8757_v13, %v8426_v11  ;;  %v10172_v17 = vpop.f32.mrb[51].mxu1 }
 0x2cb   : > { %v9098_v5 = vpop.f32.mrb[52].mxu1 }
 0x2cc   : > { %v9108_v16 = vadd.f32 %v9098_v5, %v8767_v14  ;;  %v10177_v4 = vpop.f32.mrb[53].mxu1  ;;  %v9553_v5 = vld [vmem:[%s11598_s3] sm:$0xff] }
 0x2d2   : > { %v9226_v21 = vpop.f32.mrb[0].mxu0 }
 0x2d3   : > { %v11563_v1 = vadd.f32 %v9454_v58, %v9226_v21  ;;  %v9228_v25 = vpop.f32.mrb[1].mxu0 }
 0x2d4   : > { %v11565_v26 = vadd.f32 %v9454_v58, %v9228_v25 }
 0x2d5   : > { %v9500_v3 = vmul.f32 %v9468_v54, %v11563_v1 }
 0x2d6   : > { %v9501_v27 = vmul.f32 %v9472_v22, %v11565_v26 }
 0x2d7   : > { %v9517_v29 = vmul.f32 %v9500_v3, %v9500_v3  ;;  %v9297_v30 = vpop.f32.mrb[0].mxu1 }
 0x2d8   : > { %v9518_v34 = vmul.f32 %v9501_v27, %v9501_v27  ;;  %v11569_v35 = vadd.f32 %v9454_v58, %v9297_v30  ;;  %v9299_v36 = vpop.f32.mrb[1].mxu1  ;;  %v9507_v38 = vadd.f32 %v9501_v27, %v9500_v3 }
 0x2d9   : > { %v11571_v37 = vadd.f32 %v9454_v58, %v9299_v36 }
 0x2da   : > { %v9502_v39 = vmul.f32 %v9476_v2, %v11569_v35  ;;  %v9524_v41 = vadd.f32 %v9518_v34, %v9517_v29 }
 0x2db   : > { %v9503_v0 = vmul.f32 %v9480_v31, %v11571_v37  ;;  %v9368_v42 = vpop.f32.mrb[2].mxu0  ;;  %v9439_v43 = vpop.f32.mrb[54].mxu1 }
 0x2dc   : > { %v9508_v47 = vadd.f32 %v9507_v38, %v9502_v39  ;;  %v9519_v50 = vmul.f32 %v9502_v39, %v9502_v39  ;;  %v9460_v51 = vadd.f32 %v9454_v58, %v9368_v42  ;;  %v9449_v23 = vadd.f32 %v9439_v43, %v9108_v16  ;;  %v9370_v52 = vpop.f32.mrb[3].mxu0  ;;  %v10182_v53 = vpop.f32.mrb[55].mxu1 }
 0x2dd   : > { %v9520_v55 = vmul.f32 %v9503_v0, %v9503_v0  ;;  %v9461_v56 = vadd.f32 %v9454_v58, %v9370_v52 }
 0x2de   : > { %v9525_v57 = vadd.f32 %v9524_v41, %v9519_v50  ;;  %v9509_v59 = vadd.f32 %v9508_v47, %v9503_v0  ;;  %v9504_v60 = vmul.f32 %v9484_v40, %v9460_v51  ;;  %v9462_v61 = vadd.f32 %v9454_v58, %v9449_v23 }
 0x2df   : > { %v9505_v62 = vmul.f32 %v9488_v46, %v9461_v56 }
 0x2e0   : > { %v9526_v63 = vadd.f32 %v9525_v57, %v9520_v55  ;;  %v9510_v48 = vadd.f32 %v9509_v59, %v9504_v60  ;;  %v9521_v7 = vmul.f32 %v9504_v60, %v9504_v60  ;;  %v9506_v49 = vmul.f32 %v9492_v44, %v9462_v61 }
 0x2e1   : > { %v9522_v8 = vmul.f32 %v9505_v62, %v9505_v62 }
 0x2e2   : > { %v9527_v9 = vadd.f32 %v9526_v63, %v9521_v7  ;;  %v9523_v10 = vmul.f32 %v9506_v49, %v9506_v49  ;;  %v9511_v11 = vadd.f32 %v9510_v48, %v9505_v62  ;;  %v9513_v12 = vsel %vm9512_vm1, %v9506_v49, 0.0 }
 0x2e4   : > { %v9514_v13 = vadd.f32 %v9513_v12, %v9511_v11  ;;  %v9528_v14 = vadd.f32 %v9527_v9, %v9522_v8  ;;  %v9529_v17 = vsel %vm9512_vm1, %v9523_v10, 0.0 }
 0x2e6   : > { %9515 = vadd.xlane.f32.xlu0 %v9514_v13  ;;  %v9530_v15 = vadd.f32 %v9529_v17, %v9528_v14 }
 0x2e8   : > { %9531 = vadd.xlane.f32.xlu1 %v9530_v15 }
 0x2f9   : > { %9569 = vperm.xlu1 %10378, %v9566_v45  }
 0x2fc   : > { %9556 = vperm.xlu0 %10379, %v9553_v5  }
 0x373   : > { %v9516_v16 = vpop.xlane.xlu0 %9515 }
 0x374   : > { %v9533_v4 = vmul.f32 0.001953125, %v9516_v16 }
 0x375   : > { %v9532_v18 = vpop.xlane.xlu1 %9531 }
 0x376   : > { %v9534_v19 = vmul.f32 0.001953125, %v9532_v18  ;;  %v9535_v20 = vmul.f32 %v9533_v4, %v9533_v4  ;;  %v9539_v21 = vsub.f32 %v11563_v1, %v9533_v4  ;;  %v9540_v22 = vsub.f32 %v11565_v26, %v9533_v4 }
 0x377   : > { %v9541_v24 = vsub.f32 %v11569_v35, %v9533_v4  ;;  %v9542_v25 = vsub.f32 %v11571_v37, %v9533_v4  ;;  %v9543_v3 = vsub.f32 %v9460_v51, %v9533_v4  ;;  %v9544_v27 = vsub.f32 %v9461_v56, %v9533_v4 }
 0x378   : > { %v9536_v58 = vsub.f32 %v9534_v19, %v9535_v20  ;;  %v9545_v2 = vsub.f32 %v9462_v61, %v9533_v4 }
 0x379   : > { %v9570_v35 = vpop.permute.xlu1 %9569 }
 0x37a   : > { %v9537_v54 = vadd.f32 1e-05, %v9536_v58 }
 0x37b   : > { %v9557_v28 = vpop.permute.xlu0 %9556 }
 0x37c   : > { %10390 = vrsqrt.f32 %v9537_v54 }
 0x386   : > { %v10391_v6 = vpop.eup %10390 }
 0x387   : > { %v9546_v29 = vmul.f32 %v10391_v6, %v9539_v21  ;;  %v9547_v30 = vmul.f32 %v10391_v6, %v9540_v22  ;;  %v9548_v31 = vmul.f32 %v10391_v6, %v9541_v24  ;;  %v9549_v32 = vmul.f32 %v10391_v6, %v9542_v25 }
 0x388   : > { %v9550_v33 = vmul.f32 %v10391_v6, %v9543_v3  ;;  %v9551_v34 = vmul.f32 %v10391_v6, %v9544_v27  ;;  %v9552_v36 = vmul.f32 %v10391_v6, %v9545_v2 }
 0x389   : > { %v9559_v1 = vmul.f32 %v9557_v28, %v9546_v29  ;;  %v9560_v38 = vmul.f32 %v9557_v28, %v9547_v30  ;;  %v9561_v26 = vmul.f32 %v9557_v28, %v9548_v31  ;;  %v9562_v39 = vmul.f32 %v9557_v28, %v9549_v32 }
 0x38a   : > { %v9563_v37 = vmul.f32 %v9557_v28, %v9550_v33  ;;  %v9564_v40 = vmul.f32 %v9557_v28, %v9551_v34  ;;  %v9565_v41 = vmul.f32 %v9557_v28, %v9552_v36 }
 0x38b   : > { %v9572_v0 = vadd.f32 %v9570_v35, %v9559_v1  ;;  %v9573_v42 = vadd.f32 %v9570_v35, %v9560_v38  ;;  %v9574_v43 = vadd.f32 %v9570_v35, %v9561_v26  ;;  %v9575_v44 = vadd.f32 %v9570_v35, %v9562_v39 }
 0x38c   : > { %v9576_v46 = vadd.f32 %v9570_v35, %v9563_v37  ;;  %v9577_v47 = vadd.f32 %v9570_v35, %v9564_v40  ;;  %v9578_v50 = vadd.f32 %v9570_v35, %v9565_v41 }
 0x38d   : > { %vm9579_vm2 = vcmp.ge.f32.partialorder %v9572_v0, 0.0  ;;  %vm9580_vm3 = vcmp.ge.f32.partialorder %v9573_v42, 0.0  ;;  %vm9581_vm0 = vcmp.ge.f32.partialorder %v9574_v43, 0.0  ;;  %vm9582_vm4 = vcmp.ge.f32.partialorder %v9575_v44, 0.0 }
 0x38e   : > { %vm9583_vm5 = vcmp.ge.f32.partialorder %v9576_v46, 0.0  ;;  %vm9584_vm6 = vcmp.ge.f32.partialorder %v9577_v47, 0.0  ;;  %vm9585_vm7 = vcmp.ge.f32.partialorder %v9578_v50, 0.0  ;;  %v9586_v51 = vmul.f32 0.01, %v9572_v0 }
 0x38f   : > { %v9587_v23 = vmul.f32 0.01, %v9573_v42  ;;  %v9588_v52 = vmul.f32 0.01, %v9574_v43  ;;  %v9589_v53 = vmul.f32 0.01, %v9575_v44 }
 0x390   : > { %v9590_v55 = vmul.f32 0.01, %v9576_v46  ;;  %v9591_v56 = vmul.f32 0.01, %v9577_v47  ;;  %v9592_v57 = vmul.f32 0.01, %v9578_v50  ;;  %v9593_v59 = vsel %vm9579_vm2, %v9572_v0, %v9586_v51 }
 0x391   : > { %v9594_v60 = vsel %vm9580_vm3, %v9573_v42, %v9587_v23  ;;  %v9595_v61 = vsel %vm9581_vm0, %v9574_v43, %v9588_v52  ;;  %v9596_v62 = vsel %vm9582_vm4, %v9575_v44, %v9589_v53  ;;  %9600 = vst [vmem:[%s251_s8] sm:$0xff] %v9593_v59 }
 0x392   : > { %v9597_v63 = vsel %vm9583_vm5, %v9576_v46, %v9590_v55  ;;  %v9598_v48 = vsel %vm9584_vm6, %v9577_v47, %v9591_v56  ;;  %v9599_v7 = vsel %vm9585_vm7, %v9578_v50, %v9592_v57  ;;  %9601 = vst [vmem:[%s251_s8 + $0x8] sm:$0xff] %v9594_v60  ;;  %9602 = vst [vmem:[%s251_s8 + $0x10] sm:$0xff] %v9595_v61 }
 0x393   : > { %9603 = vst [vmem:[%s251_s8 + $0x18] sm:$0xff] %v9596_v62  ;;  %9604 = vst [vmem:[%s251_s8 + $0x20] sm:$0xff] %v9597_v63 }
 0x394   : > { %9605 = vst [vmem:[%s251_s8 + $0x28] sm:$0xff] %v9598_v48  ;;  %9606 = vst.msk [vmem:[%s251_s8 + $0x30] sm:$0xff] %vm9512_vm1, %v9599_v7 }
 0x395 PF: > { %s16_s21 = sadd.s32 1, %s10398_s21  }
 0x396   : > { %p13_p4 = scmp.ge.s32.totalorder %s16_s21, 4  }
 0x398   :  { %15 = sbr.rel (!%p13_p4) target bundleno = 1 (0x1), region = 100 }

</bundles_post_ra>
